<compile_context>
chip_gen: v7x
topology: tpu7x:2x2x1
jax: 0.10.0
libtpu: 0.0.40
codegen_flags: <defaults>
</compile_context>

<pallas_src>
import functools

import jax
import jax.numpy as jnp
from jax import lax
from jax.experimental import pallas as pl
from jax.experimental.pallas import tpu as pltpu


def _cdiv(a, b):
    return -(-a // b)


def _layer_norm_f32(h, gamma, beta, eps):
    """LayerNorm over channels (last axis), f32 math, single-pass statistics."""
    c_inv = 1.0 / h.shape[-1]
    s1 = jnp.sum(h, axis=-1, keepdims=True)
    s2 = jnp.sum(h * h, axis=-1, keepdims=True)
    mean = s1 * c_inv
    var = s2 * c_inv - mean * mean          # E[h^2] - E[h]^2: one traversal
    inv = lax.rsqrt(var + eps)              # EUP slot
    return (h - mean) * inv * gamma + beta


def _temporal_predictor_kernel(
    enc_ref, mask_ref,
    w0_ref, b0_ref, g0_ref, be0_ref,
    w1_ref, b1_ref, g1_ref, be1_ref,
    wfc_ref, bfc_ref,
    out_ref,
    *, kernel_size, seq_len, t_tile, eps,
):
    K = kernel_size
    p = K // 2
    halo = 2 * p                      # halo needed for the two fused conv layers
    t_win = t_tile + 2 * halo         # input rows read for this tile
    r0 = t_tile + 2 * p               # layer-0 rows needed so layer-1 has valid halo

    t = pl.program_id(1)
    start = pl.multiple_of(t * t_tile, t_tile)

    # (t_win, Cin) window; the wrapper already applied enc * enc_mask and the
    # +-halo zero padding, so no in-kernel concatenate / padded copy is needed.
    x = enc_ref[pl.ds(start, t_win), :]

    # ---- layer 0: Conv1d(K, pad=p) as K accumulated 2-D MXU matmuls + ReLU + LN.
    w0 = w0_ref[...]                                       # (K, Cin, F)
    acc = jnp.dot(x[0:r0, :], w0[0], preferred_element_type=jnp.float32)
    for k in range(1, K):                                  # K is tiny & static
        acc = acc + jnp.dot(x[k:k + r0, :], w0[k],
                            preferred_element_type=jnp.float32)
    h = jnp.maximum(acc + b0_ref[...], 0.0)
    h = _layer_norm_f32(h, g0_ref[...], be0_ref[...], eps)

    # Zero halo rows that fall outside the true sequence: this reproduces the
    # zero padding layer 1's Conv1d would see at the sequence boundaries.
    pos = t * t_tile - p + lax.broadcasted_iota(jnp.int32, (r0, 1), 0)
    h = jnp.where(jnp.logical_and(pos >= 0, pos < seq_len), h, 0.0)
    h = h.astype(w1_ref.dtype)

    # ---- layer 1: same Conv -> ReLU -> LN over the t_tile output rows.
    w1 = w1_ref[...]                                       # (K, F, F)
    acc = jnp.dot(h[0:t_tile, :], w1[0], preferred_element_type=jnp.float32)
    for k in range(1, K):
        acc = acc + jnp.dot(h[k:k + t_tile, :], w1[k],
                            preferred_element_type=jnp.float32)
    h1 = jnp.maximum(acc + b1_ref[...], 0.0)
    h1 = _layer_norm_f32(h1, g1_ref[...], be1_ref[...], eps)   # (t_tile, F) f32

    # ---- fc: Linear(F, 1) as VPU multiply + cross-lane reduction (an N=1 MXU
    # matmul would waste 127/128 output columns).
    y = jnp.sum(h1 * wfc_ref[...], axis=-1) + bfc_ref[0, 0]    # (t_tile,)
    out_ref[0, :] = (y * mask_ref[0, :]).astype(out_ref.dtype)


def temporal_predictor(enc, enc_mask, params, *, kernel_size, t_tile=256,
                       compute_dtype=jnp.float32, eps=1e-5):
    """enc: (B, T, input_size); enc_mask: (B, T) or (B, T, 1) -> (B, T) float32.

    params = (w0, b0, g0, be0, w1, b1, g1, be1, wfc, bfc) with
      w0: (K, Cin, F)  w1: (K, F, F)  b*/g*/be*: (1, F)  wfc: (F, 1)  bfc: (1, 1)
    compute_dtype: matmul-input dtype (f32, or bf16 with f32 accumulation);
    LayerNorm / bias / fc math always stays in f32.
    """
    (w0, b0, g0, be0, w1, b1, g1, be1, wfc, bfc) = params
    B, T, Cin = enc.shape
    K = kernel_size
    F = w0.shape[-1]
    assert w0.shape == (K, Cin, F) and w1.shape == (K, F, F)
    assert t_tile % 128 == 0, "t_tile must be a multiple of 128 (lane-dense output)"

    p = K // 2
    halo = 2 * p
    n_tb = _cdiv(T, t_tile)
    t_pad = n_tb * t_tile
    t_ext = t_pad + 2 * halo

    # enc * enc_mask (module semantics) fused into the unavoidable pad/copy;
    # +-halo zero padding supplies the conv boundary zeros for both layers.
    mask2d = enc_mask.reshape(B, T).astype(jnp.float32)
    enc_masked = (enc.astype(jnp.float32) * mask2d[..., None]).astype(compute_dtype)
    enc_p = jnp.zeros((B, t_ext, Cin), compute_dtype)
    enc_p = lax.dynamic_update_slice(enc_p, enc_masked, (0, halo, 0))

    # Lane-dense per-tile output mask blocks: (B, n_tb, 1, t_tile).
    mask_pad = jnp.zeros((B, t_pad), jnp.float32)
    mask_pad = lax.dynamic_update_slice(mask_pad, mask2d, (0, 0))
    mask_blk = mask_pad.reshape(B, n_tb, 1, t_tile)

    # Weights: conv weights in the matmul dtype; LN/bias/fc params stay f32.
    w0c = w0.astype(compute_dtype)
    w1c = w1.astype(compute_dtype)
    b0r = b0.reshape(1, F).astype(jnp.float32)
    g0r = g0.reshape(1, F).astype(jnp.float32)
    be0r = be0.reshape(1, F).astype(jnp.float32)
    b1r = b1.reshape(1, F).astype(jnp.float32)
    g1r = g1.reshape(1, F).astype(jnp.float32)
    be1r = be1.reshape(1, F).astype(jnp.float32)
    wfc_row = wfc.reshape(1, F).astype(jnp.float32)   # lane-dense row, not (F, 1)
    bfc_r = bfc.reshape(1, 1).astype(jnp.float32)

    kernel = functools.partial(
        _temporal_predictor_kernel,
        kernel_size=K, seq_len=T, t_tile=t_tile, eps=eps)

    resident = lambda b, t: (0, 0)          # small params: fetched once, stay in VMEM
    resident3 = lambda b, t: (0, 0, 0)

    out = pl.pallas_call(
        kernel,
        grid=(B, n_tb),
        in_specs=[
            # full padded sequence of batch element b stays VMEM-resident across
            # its t-tiles (block index ignores t) -> exact conv halo via pl.ds.
            pl.BlockSpec((None, t_ext, Cin), lambda b, t: (b, 0, 0)),
            pl.BlockSpec((None, None, 1, t_tile), lambda b, t: (b, t, 0, 0)),
            pl.BlockSpec((K, Cin, F), resident3),
            pl.BlockSpec((1, F), resident),
            pl.BlockSpec((1, F), resident),
            pl.BlockSpec((1, F), resident),
            pl.BlockSpec((K, F, F), resident3),
            pl.BlockSpec((1, F), resident),
            pl.BlockSpec((1, F), resident),
            pl.BlockSpec((1, F), resident),
            pl.BlockSpec((1, F), resident),
            pl.BlockSpec((1, 1), resident),
        ],
        out_specs=pl.BlockSpec((None, None, 1, t_tile), lambda b, t: (b, t, 0, 0)),
        out_shape=jax.ShapeDtypeStruct((B, n_tb, 1, t_tile), jnp.float32),
        compiler_params=pltpu.CompilerParams(
            dimension_semantics=("parallel", "parallel")),
    )(enc_p, mask_blk, w0c, b0r, g0r, be0r, w1c, b1r, g1r, be1r, wfc_row, bfc_r)

    return out.reshape(B, t_pad)[:, :T]


def _reference(enc, enc_mask, params, *, kernel_size, eps=1e-5):
    """Pure-JAX reference mirroring the PyTorch forward (channels-last, f32)."""
    (w0, b0, g0, be0, w1, b1, g1, be1, wfc, bfc) = params
    mask = enc_mask.reshape(enc.shape[0], enc.shape[1], 1)
    x = enc * mask
    for (w, b, g, be) in ((w0, b0, g0, be0), (w1, b1, g1, be1)):
        K = kernel_size
        p = K // 2
        T = x.shape[1]
        xp = jnp.pad(x, ((0, 0), (p, p), (0, 0)))
        acc = sum(jnp.einsum("btc,co->bto", xp[:, k:k + T, :], w[k]) for k in range(K))
        h = jax.nn.relu(acc + b)
        mean = jnp.mean(h, axis=-1, keepdims=True)
        var = jnp.mean((h - mean) ** 2, axis=-1, keepdims=True)
        x = (h - mean) / jnp.sqrt(var + eps) * g + be
    y = (jnp.einsum("btf,fo->bto", x, wfc) + bfc) * mask
    return y[..., 0]


if __name__ == "__main__":
    # Small shapes consistent with the module; T deliberately NOT a multiple of
    # the tile so the halo / tail-padding / masking paths are all exercised.
    B, T = 2, 200
    input_size = 32      # encoder hidden
    filter_size = 32
    kernel_size = 3
    T_TILE = 128

    key = jax.random.PRNGKey(0)
    ks = jax.random.split(key, 12)

    enc = jax.random.normal(ks[0], (B, T, input_size), jnp.float32)
    # enc_mask: 1.0 for valid frames, 0.0 for padding (per-batch lengths).
    lengths = jnp.array([T, T - 37], jnp.int32)
    t_idx = jnp.arange(T)[None, :]
    enc_mask = (t_idx < lengths[:, None]).astype(jnp.float32)[..., None]  # (B, T, 1)

    # Deterministic synthetic parameters (shapes per module __init__).
    s = 0.2
    w0 = s * jax.random.normal(ks[1], (kernel_size, input_size, filter_size), jnp.float32)
    b0 = s * jax.random.normal(ks[2], (1, filter_size), jnp.float32)
    g0 = 1.0 + s * jax.random.normal(ks[3], (1, filter_size), jnp.float32)
    be0 = s * jax.random.normal(ks[4], (1, filter_size), jnp.float32)

    w1 = s * jax.random.normal(ks[5], (kernel_size, filter_size, filter_size), jnp.float32)
    b1 = s * jax.random.normal(ks[6], (1, filter_size), jnp.float32)
    g1 = 1.0 + s * jax.random.normal(ks[7], (1, filter_size), jnp.float32)
    be1 = s * jax.random.normal(ks[8], (1, filter_size), jnp.float32)

    wfc = s * jax.random.normal(ks[9], (filter_size, 1), jnp.float32)
    bfc = s * jax.random.normal(ks[10], (1, 1), jnp.float32)

    params = (w0, b0, g0, be0, w1, b1, g1, be1, wfc, bfc)
    ref = _reference(enc, enc_mask, params, kernel_size=kernel_size)

    # f32 path: strict check against the reference.
    out = temporal_predictor(enc, enc_mask, params, kernel_size=kernel_size,
                             t_tile=T_TILE, compute_dtype=jnp.float32)
    out = jax.block_until_ready(out)
    assert out.shape == (B, T)
    assert jnp.allclose(out, ref, rtol=1e-4, atol=1e-4), (
        f"f32 max abs err {jnp.max(jnp.abs(out - ref))}"
    )

    # bf16-matmul / f32-accumulate path (v6e / v7x recommendation): loose smoke
    # check only -- bf16 inputs intentionally trade a little precision.
    out_bf16 = temporal_predictor(enc, enc_mask, params, kernel_size=kernel_size,
                                  t_tile=T_TILE, compute_dtype=jnp.bfloat16)
    out_bf16 = jax.block_until_ready(out_bf16)
    assert jnp.allclose(out_bf16, ref, rtol=1e-1, atol=2.5e-1), (
        f"bf16 max abs err {jnp.max(jnp.abs(out_bf16 - ref))}"
    )

    # TODO(synk): training-mode Dropout (RNG) and non-empty condition_types
    # (ConditionalLayerNorm conditioning) are not modeled; both are identity here.
    print("KERNEL_OK")
</pallas_src>

<mosaic_0001>
module attributes {stable_mosaic.version = 11 : i64} {
  func.func @_temporal_predictor_kernel(%arg0: i32, %arg1: i32, %arg2: memref<1x260x32xf32, #tpu.memory_space<vmem>>, %arg3: memref<1x1x1x128xf32, #tpu.memory_space<vmem>>, %arg4: memref<3x32x32xf32, #tpu.memory_space<vmem>>, %arg5: memref<1x32xf32, #tpu.memory_space<vmem>>, %arg6: memref<1x32xf32, #tpu.memory_space<vmem>>, %arg7: memref<1x32xf32, #tpu.memory_space<vmem>>, %arg8: memref<3x32x32xf32, #tpu.memory_space<vmem>>, %arg9: memref<1x32xf32, #tpu.memory_space<vmem>>, %arg10: memref<1x32xf32, #tpu.memory_space<vmem>>, %arg11: memref<1x32xf32, #tpu.memory_space<vmem>>, %arg12: memref<1x32xf32, #tpu.memory_space<vmem>>, %arg13: memref<1x1xf32, #tpu.memory_space<vmem>>, %arg14: memref<1x1x1x128xf32, #tpu.memory_space<vmem>>) attributes {dimension_semantics = [#tpu.dimension_semantics<parallel>, #tpu.dimension_semantics<parallel>], iteration_bounds = array<i64: 2, 2>, scalar_prefetch = 0 : i64, scratch_operands = 0 : i64, tpu.core_type = #tpu.core_type<tc>, window_params = [{transform_indices = @transform_0, window_bounds = array<i64: 1, 260, 32>}, {transform_indices = @transform_1, window_bounds = array<i64: 1, 1, 1, 128>}, {pipeline_mode = #tpu.pipeline_mode<synchronous>, transform_indices = @transform_2, window_bounds = array<i64: 3, 32, 32>}, {pipeline_mode = #tpu.pipeline_mode<synchronous>, transform_indices = @transform_3, window_bounds = array<i64: 1, 32>}, {pipeline_mode = #tpu.pipeline_mode<synchronous>, transform_indices = @transform_4, window_bounds = array<i64: 1, 32>}, {pipeline_mode = #tpu.pipeline_mode<synchronous>, transform_indices = @transform_5, window_bounds = array<i64: 1, 32>}, {pipeline_mode = #tpu.pipeline_mode<synchronous>, transform_indices = @transform_6, window_bounds = array<i64: 3, 32, 32>}, {pipeline_mode = #tpu.pipeline_mode<synchronous>, transform_indices = @transform_7, window_bounds = array<i64: 1, 32>}, {pipeline_mode = #tpu.pipeline_mode<synchronous>, transform_indices = @transform_8, window_bounds = array<i64: 1, 32>}, {pipeline_mode = #tpu.pipeline_mode<synchronous>, transform_indices = @transform_9, window_bounds = array<i64: 1, 32>}, {pipeline_mode = #tpu.pipeline_mode<synchronous>, transform_indices = @transform_10, window_bounds = array<i64: 1, 32>}, {pipeline_mode = #tpu.pipeline_mode<synchronous>, transform_indices = @transform_11, window_bounds = array<i64: 1, 1>}, {transform_indices = @transform_12, window_bounds = array<i64: 1, 1, 1, 128>}]} {
    %c128_i32 = arith.constant 128 : i32
    %0 = arith.muli %arg1, %c128_i32 : i32
    %1 = tpu.assume_multiple %0, 128 : i32
    %c0 = arith.constant 0 : index
    %2 = arith.index_cast %1 : i32 to index
    %c0_0 = arith.constant 0 : index
    %3 = vector.load %arg2[%c0, %2, %c0_0] : memref<1x260x32xf32, #tpu.memory_space<vmem>>, vector<1x132x32xf32>
    %4 = vector.shape_cast %3 : vector<1x132x32xf32> to vector<132x32xf32>
    %c0_1 = arith.constant 0 : index
    %c0_2 = arith.constant 0 : index
    %c0_3 = arith.constant 0 : index
    %5 = vector.load %arg4[%c0_1, %c0_2, %c0_3] : memref<3x32x32xf32, #tpu.memory_space<vmem>>, vector<3x32x32xf32>
    %6 = vector.extract_strided_slice %4 {offsets = [0, 0], sizes = [130, 32], strides = [1, 1]} : vector<132x32xf32> to vector<130x32xf32>
    %7 = vector.extract_strided_slice %5 {offsets = [0, 0, 0], sizes = [1, 32, 32], strides = [1, 1, 1]} : vector<3x32x32xf32> to vector<1x32x32xf32>
    %8 = vector.shape_cast %7 : vector<1x32x32xf32> to vector<32x32xf32>
    %cst = arith.constant dense<0.000000e+00> : vector<130x32xf32>
    %9 = tpu.matmul %6, %8, %cst {dimension_numbers = #tpu.dot_dimension_numbers<[1], [0], [0], [1], [0, 0, 1, 1], [], []>} : vector<130x32xf32>, vector<32x32xf32>, vector<130x32xf32> -> vector<130x32xf32>
    %10 = vector.extract_strided_slice %4 {offsets = [1, 0], sizes = [130, 32], strides = [1, 1]} : vector<132x32xf32> to vector<130x32xf32>
    %11 = vector.extract_strided_slice %5 {offsets = [1, 0, 0], sizes = [1, 32, 32], strides = [1, 1, 1]} : vector<3x32x32xf32> to vector<1x32x32xf32>
    %12 = vector.shape_cast %11 : vector<1x32x32xf32> to vector<32x32xf32>
    %cst_4 = arith.constant dense<0.000000e+00> : vector<130x32xf32>
    %13 = tpu.matmul %10, %12, %cst_4 {dimension_numbers = #tpu.dot_dimension_numbers<[1], [0], [0], [1], [0, 0, 1, 1], [], []>} : vector<130x32xf32>, vector<32x32xf32>, vector<130x32xf32> -> vector<130x32xf32>
    %14 = arith.addf %9, %13 : vector<130x32xf32>
    %15 = vector.extract_strided_slice %4 {offsets = [2, 0], sizes = [130, 32], strides = [1, 1]} : vector<132x32xf32> to vector<130x32xf32>
    %16 = vector.extract_strided_slice %5 {offsets = [2, 0, 0], sizes = [1, 32, 32], strides = [1, 1, 1]} : vector<3x32x32xf32> to vector<1x32x32xf32>
    %17 = vector.shape_cast %16 : vector<1x32x32xf32> to vector<32x32xf32>
    %cst_5 = arith.constant dense<0.000000e+00> : vector<130x32xf32>
    %18 = tpu.matmul %15, %17, %cst_5 {dimension_numbers = #tpu.dot_dimension_numbers<[1], [0], [0], [1], [0, 0, 1, 1], [], []>} : vector<130x32xf32>, vector<32x32xf32>, vector<130x32xf32> -> vector<130x32xf32>
    %19 = arith.addf %14, %18 : vector<130x32xf32>
    %c0_6 = arith.constant 0 : index
    %c0_7 = arith.constant 0 : index
    %20 = vector.load %arg5[%c0_6, %c0_7] : memref<1x32xf32, #tpu.memory_space<vmem>>, vector<1x32xf32>
    %21 = vector.broadcast %20 : vector<1x32xf32> to vector<130x32xf32>
    %22 = arith.addf %19, %21 : vector<130x32xf32>
    %cst_8 = arith.constant 0.000000e+00 : f32
    %23 = vector.broadcast %cst_8 : f32 to vector<130x32xf32>
    %24 = arith.maximumf %22, %23 : vector<130x32xf32>
    %c0_9 = arith.constant 0 : index
    %c0_10 = arith.constant 0 : index
    %25 = vector.load %arg6[%c0_9, %c0_10] : memref<1x32xf32, #tpu.memory_space<vmem>>, vector<1x32xf32>
    %c0_11 = arith.constant 0 : index
    %c0_12 = arith.constant 0 : index
    %26 = vector.load %arg7[%c0_11, %c0_12] : memref<1x32xf32, #tpu.memory_space<vmem>>, vector<1x32xf32>
    %cst_13 = arith.constant dense<0.000000e+00> : vector<130xf32>
    %27 = vector.multi_reduction <add>, %24, %cst_13 [1] : vector<130x32xf32> to vector<130xf32>
    %28 = vector.shape_cast %27 : vector<130xf32> to vector<130x1xf32>
    %29 = arith.mulf %24, %24 : vector<130x32xf32>
    %cst_14 = arith.constant dense<0.000000e+00> : vector<130xf32>
    %30 = vector.multi_reduction <add>, %29, %cst_14 [1] : vector<130x32xf32> to vector<130xf32>
    %31 = vector.shape_cast %30 : vector<130xf32> to vector<130x1xf32>
    %cst_15 = arith.constant 3.125000e-02 : f32
    %32 = vector.broadcast %cst_15 : f32 to vector<130x1xf32>
    %33 = arith.mulf %28, %32 : vector<130x1xf32>
    %cst_16 = arith.constant 3.125000e-02 : f32
    %34 = vector.broadcast %cst_16 : f32 to vector<130x1xf32>
    %35 = arith.mulf %31, %34 : vector<130x1xf32>
    %36 = arith.mulf %33, %33 : vector<130x1xf32>
    %37 = arith.subf %35, %36 : vector<130x1xf32>
    %cst_17 = arith.constant 9.99999974E-6 : f32
    %38 = vector.broadcast %cst_17 : f32 to vector<130x1xf32>
    %39 = arith.addf %37, %38 : vector<130x1xf32>
    %40 = math.rsqrt %39 : vector<130x1xf32>
    %41 = vector.broadcast %33 : vector<130x1xf32> to vector<130x32xf32>
    %42 = arith.subf %24, %41 : vector<130x32xf32>
    %43 = vector.broadcast %40 : vector<130x1xf32> to vector<130x32xf32>
    %44 = arith.mulf %42, %43 : vector<130x32xf32>
    %45 = vector.broadcast %25 : vector<1x32xf32> to vector<130x32xf32>
    %46 = arith.mulf %44, %45 : vector<130x32xf32>
    %47 = vector.broadcast %26 : vector<1x32xf32> to vector<130x32xf32>
    %48 = arith.addf %46, %47 : vector<130x32xf32>
    %c128_i32_18 = arith.constant 128 : i32
    %49 = arith.muli %arg1, %c128_i32_18 : i32
    %c1_i32 = arith.constant 1 : i32
    %50 = arith.subi %49, %c1_i32 : i32
    %51 = tpu.iota {dimensions = array<i32: 0>} : vector<130x1xi32>
    %52 = vector.broadcast %50 : i32 to vector<130x1xi32>
    %53 = arith.addi %52, %51 : vector<130x1xi32>
    %c0_i32 = arith.constant 0 : i32
    %54 = vector.broadcast %c0_i32 : i32 to vector<130x1xi32>
    %55 = arith.cmpi sge, %53, %54 : vector<130x1xi32>
    %c200_i32 = arith.constant 200 : i32
    %56 = vector.broadcast %c200_i32 : i32 to vector<130x1xi32>
    %57 = arith.cmpi slt, %53, %56 : vector<130x1xi32>
    %58 = arith.andi %55, %57 : vector<130x1xi1>
    %cst_19 = arith.constant 0.000000e+00 : f32
    %59 = vector.shape_cast %58 : vector<130x1xi1> to vector<130x1xi1>
    %60 = vector.broadcast %59 : vector<130x1xi1> to vector<130x32xi1>
    %61 = vector.broadcast %cst_19 : f32 to vector<130x32xf32>
    %62 = arith.select %60, %48, %61 : vector<130x32xi1>, vector<130x32xf32>
    %c0_20 = arith.constant 0 : index
    %c0_21 = arith.constant 0 : index
    %c0_22 = arith.constant 0 : index
    %63 = vector.load %arg8[%c0_20, %c0_21, %c0_22] : memref<3x32x32xf32, #tpu.memory_space<vmem>>, vector<3x32x32xf32>
    %64 = vector.extract_strided_slice %62 {offsets = [0, 0], sizes = [128, 32], strides = [1, 1]} : vector<130x32xf32> to vector<128x32xf32>
    %65 = vector.extract_strided_slice %63 {offsets = [0, 0, 0], sizes = [1, 32, 32], strides = [1, 1, 1]} : vector<3x32x32xf32> to vector<1x32x32xf32>
    %66 = vector.shape_cast %65 : vector<1x32x32xf32> to vector<32x32xf32>
    %cst_23 = arith.constant dense<0.000000e+00> : vector<128x32xf32>
    %67 = tpu.matmul %64, %66, %cst_23 {dimension_numbers = #tpu.dot_dimension_numbers<[1], [0], [0], [1], [0, 0, 1, 1], [], []>} : vector<128x32xf32>, vector<32x32xf32>, vector<128x32xf32> -> vector<128x32xf32>
    %68 = vector.extract_strided_slice %62 {offsets = [1, 0], sizes = [128, 32], strides = [1, 1]} : vector<130x32xf32> to vector<128x32xf32>
    %69 = vector.extract_strided_slice %63 {offsets = [1, 0, 0], sizes = [1, 32, 32], strides = [1, 1, 1]} : vector<3x32x32xf32> to vector<1x32x32xf32>
    %70 = vector.shape_cast %69 : vector<1x32x32xf32> to vector<32x32xf32>
    %cst_24 = arith.constant dense<0.000000e+00> : vector<128x32xf32>
    %71 = tpu.matmul %68, %70, %cst_24 {dimension_numbers = #tpu.dot_dimension_numbers<[1], [0], [0], [1], [0, 0, 1, 1], [], []>} : vector<128x32xf32>, vector<32x32xf32>, vector<128x32xf32> -> vector<128x32xf32>
    %72 = arith.addf %67, %71 : vector<128x32xf32>
    %73 = vector.extract_strided_slice %62 {offsets = [2, 0], sizes = [128, 32], strides = [1, 1]} : vector<130x32xf32> to vector<128x32xf32>
    %74 = vector.extract_strided_slice %63 {offsets = [2, 0, 0], sizes = [1, 32, 32], strides = [1, 1, 1]} : vector<3x32x32xf32> to vector<1x32x32xf32>
    %75 = vector.shape_cast %74 : vector<1x32x32xf32> to vector<32x32xf32>
    %cst_25 = arith.constant dense<0.000000e+00> : vector<128x32xf32>
    %76 = tpu.matmul %73, %75, %cst_25 {dimension_numbers = #tpu.dot_dimension_numbers<[1], [0], [0], [1], [0, 0, 1, 1], [], []>} : vector<128x32xf32>, vector<32x32xf32>, vector<128x32xf32> -> vector<128x32xf32>
    %77 = arith.addf %72, %76 : vector<128x32xf32>
    %c0_26 = arith.constant 0 : index
    %c0_27 = arith.constant 0 : index
    %78 = vector.load %arg9[%c0_26, %c0_27] : memref<1x32xf32, #tpu.memory_space<vmem>>, vector<1x32xf32>
    %79 = vector.broadcast %78 : vector<1x32xf32> to vector<128x32xf32>
    %80 = arith.addf %77, %79 : vector<128x32xf32>
    %cst_28 = arith.constant 0.000000e+00 : f32
    %81 = vector.broadcast %cst_28 : f32 to vector<128x32xf32>
    %82 = arith.maximumf %80, %81 : vector<128x32xf32>
    %c0_29 = arith.constant 0 : index
    %c0_30 = arith.constant 0 : index
    %83 = vector.load %arg10[%c0_29, %c0_30] : memref<1x32xf32, #tpu.memory_space<vmem>>, vector<1x32xf32>
    %c0_31 = arith.constant 0 : index
    %c0_32 = arith.constant 0 : index
    %84 = vector.load %arg11[%c0_31, %c0_32] : memref<1x32xf32, #tpu.memory_space<vmem>>, vector<1x32xf32>
    %cst_33 = arith.constant dense<0.000000e+00> : vector<128xf32>
    %85 = vector.multi_reduction <add>, %82, %cst_33 [1] : vector<128x32xf32> to vector<128xf32>
    %86 = vector.shape_cast %85 : vector<128xf32> to vector<128x1xf32>
    %87 = arith.mulf %82, %82 : vector<128x32xf32>
    %cst_34 = arith.constant dense<0.000000e+00> : vector<128xf32>
    %88 = vector.multi_reduction <add>, %87, %cst_34 [1] : vector<128x32xf32> to vector<128xf32>
    %89 = vector.shape_cast %88 : vector<128xf32> to vector<128x1xf32>
    %cst_35 = arith.constant 3.125000e-02 : f32
    %90 = vector.broadcast %cst_35 : f32 to vector<128x1xf32>
    %91 = arith.mulf %86, %90 : vector<128x1xf32>
    %cst_36 = arith.constant 3.125000e-02 : f32
    %92 = vector.broadcast %cst_36 : f32 to vector<128x1xf32>
    %93 = arith.mulf %89, %92 : vector<128x1xf32>
    %94 = arith.mulf %91, %91 : vector<128x1xf32>
    %95 = arith.subf %93, %94 : vector<128x1xf32>
    %cst_37 = arith.constant 9.99999974E-6 : f32
    %96 = vector.broadcast %cst_37 : f32 to vector<128x1xf32>
    %97 = arith.addf %95, %96 : vector<128x1xf32>
    %98 = math.rsqrt %97 : vector<128x1xf32>
    %99 = vector.broadcast %91 : vector<128x1xf32> to vector<128x32xf32>
    %100 = arith.subf %82, %99 : vector<128x32xf32>
    %101 = vector.broadcast %98 : vector<128x1xf32> to vector<128x32xf32>
    %102 = arith.mulf %100, %101 : vector<128x32xf32>
    %103 = vector.broadcast %83 : vector<1x32xf32> to vector<128x32xf32>
    %104 = arith.mulf %102, %103 : vector<128x32xf32>
    %105 = vector.broadcast %84 : vector<1x32xf32> to vector<128x32xf32>
    %106 = arith.addf %104, %105 : vector<128x32xf32>
    %c0_38 = arith.constant 0 : index
    %c0_39 = arith.constant 0 : index
    %107 = vector.load %arg12[%c0_38, %c0_39] : memref<1x32xf32, #tpu.memory_space<vmem>>, vector<1x32xf32>
    %108 = vector.broadcast %107 : vector<1x32xf32> to vector<128x32xf32>
    %109 = arith.mulf %106, %108 : vector<128x32xf32>
    %cst_40 = arith.constant dense<0.000000e+00> : vector<128xf32>
    %110 = vector.multi_reduction <add>, %109, %cst_40 [1] : vector<128x32xf32> to vector<128xf32>
    %c0_41 = arith.constant 0 : index
    %c0_42 = arith.constant 0 : index
    %111 = vector.load %arg13[%c0_41, %c0_42] : memref<1x1xf32, #tpu.memory_space<vmem>>, vector<1x1xf32>
    %112 = vector.extract %111[0, 0] : f32 from vector<1x1xf32>
    %113 = vector.broadcast %112 : f32 to vector<128xf32>
    %114 = arith.addf %110, %113 : vector<128xf32>
    %c0_43 = arith.constant 0 : index
    %c0_44 = arith.constant 0 : index
    %c0_45 = arith.constant 0 : index
    %c0_46 = arith.constant 0 : index
    %115 = vector.load %arg3[%c0_43, %c0_44, %c0_45, %c0_46] : memref<1x1x1x128xf32, #tpu.memory_space<vmem>>, vector<1x1x1x128xf32>
    %116 = vector.shape_cast %115 : vector<1x1x1x128xf32> to vector<128xf32>
    %117 = arith.mulf %114, %116 : vector<128xf32>
    %c0_47 = arith.constant 0 : index
    %c0_48 = arith.constant 0 : index
    %c0_49 = arith.constant 0 : index
    %c0_50 = arith.constant 0 : index
    %118 = vector.load %arg14[%c0_47, %c0_48, %c0_49, %c0_50] : memref<1x1x1x128xf32, #tpu.memory_space<vmem>>, vector<1x1x1x128xf32>
    %119 = vector.shape_cast %118 : vector<1x1x1x128xf32> to vector<128xf32>
    %120 = vector.shape_cast %117 : vector<128xf32> to vector<1x1x1x128xf32>
    tpu.vector_store %arg14[%c0_47, %c0_48, %c0_49, %c0_50], %120 {strides = array<i32>} : memref<1x1x1x128xf32, #tpu.memory_space<vmem>>, vector<1x1x1x128xf32>,
    return
  }
  func.func @transform_0(%arg0: i32, %arg1: i32) -> (i32, i32, i32) {
    %c0_i32 = arith.constant 0 : i32
    %c0_i32_0 = arith.constant 0 : i32
    %c0_i32_1 = arith.constant 0 : i32
    return %arg0, %c0_i32, %c0_i32_0 : i32, i32, i32
  }
  func.func @transform_1(%arg0: i32, %arg1: i32) -> (i32, i32, i32, i32) {
    %c0_i32 = arith.constant 0 : i32
    %c0_i32_0 = arith.constant 0 : i32
    %c0_i32_1 = arith.constant 0 : i32
    return %arg0, %arg1, %c0_i32, %c0_i32_0 : i32, i32, i32, i32
  }
  func.func @transform_2(%arg0: i32, %arg1: i32) -> (i32, i32, i32) {
    %c0_i32 = arith.constant 0 : i32
    %c0_i32_0 = arith.constant 0 : i32
    %c0_i32_1 = arith.constant 0 : i32
    %c0_i32_2 = arith.constant 0 : i32
    return %c0_i32, %c0_i32_0, %c0_i32_1 : i32, i32, i32
  }
  func.func @transform_3(%arg0: i32, %arg1: i32) -> (i32, i32) {
    %c0_i32 = arith.constant 0 : i32
    %c0_i32_0 = arith.constant 0 : i32
    %c0_i32_1 = arith.constant 0 : i32
    return %c0_i32, %c0_i32_0 : i32, i32
  }
  func.func @transform_4(%arg0: i32, %arg1: i32) -> (i32, i32) {
    %c0_i32 = arith.constant 0 : i32
    %c0_i32_0 = arith.constant 0 : i32
    %c0_i32_1 = arith.constant 0 : i32
    return %c0_i32, %c0_i32_0 : i32, i32
  }
  func.func @transform_5(%arg0: i32, %arg1: i32) -> (i32, i32) {
    %c0_i32 = arith.constant 0 : i32
    %c0_i32_0 = arith.constant 0 : i32
    %c0_i32_1 = arith.constant 0 : i32
    return %c0_i32, %c0_i32_0 : i32, i32
  }
  func.func @transform_6(%arg0: i32, %arg1: i32) -> (i32, i32, i32) {
    %c0_i32 = arith.constant 0 : i32
    %c0_i32_0 = arith.constant 0 : i32
    %c0_i32_1 = arith.constant 0 : i32
    %c0_i32_2 = arith.constant 0 : i32
    return %c0_i32, %c0_i32_0, %c0_i32_1 : i32, i32, i32
  }
  func.func @transform_7(%arg0: i32, %arg1: i32) -> (i32, i32) {
    %c0_i32 = arith.constant 0 : i32
    %c0_i32_0 = arith.constant 0 : i32
    %c0_i32_1 = arith.constant 0 : i32
    return %c0_i32, %c0_i32_0 : i32, i32
  }
  func.func @transform_8(%arg0: i32, %arg1: i32) -> (i32, i32) {
    %c0_i32 = arith.constant 0 : i32
    %c0_i32_0 = arith.constant 0 : i32
    %c0_i32_1 = arith.constant 0 : i32
    return %c0_i32, %c0_i32_0 : i32, i32
  }
  func.func @transform_9(%arg0: i32, %arg1: i32) -> (i32, i32) {
    %c0_i32 = arith.constant 0 : i32
    %c0_i32_0 = arith.constant 0 : i32
    %c0_i32_1 = arith.constant 0 : i32
    return %c0_i32, %c0_i32_0 : i32, i32
  }
  func.func @transform_10(%arg0: i32, %arg1: i32) -> (i32, i32) {
    %c0_i32 = arith.constant 0 : i32
    %c0_i32_0 = arith.constant 0 : i32
    %c0_i32_1 = arith.constant 0 : i32
    return %c0_i32, %c0_i32_0 : i32, i32
  }
  func.func @transform_11(%arg0: i32, %arg1: i32) -> (i32, i32) {
    %c0_i32 = arith.constant 0 : i32
    %c0_i32_0 = arith.constant 0 : i32
    %c0_i32_1 = arith.constant 0 : i32
    return %c0_i32, %c0_i32_0 : i32, i32
  }
  func.func @transform_12(%arg0: i32, %arg1: i32) -> (i32, i32, i32, i32) {
    %c0_i32 = arith.constant 0 : i32
    %c0_i32_0 = arith.constant 0 : i32
    %c0_i32_1 = arith.constant 0 : i32
    return %arg0, %arg1, %c0_i32, %c0_i32_0 : i32, i32, i32, i32
  }
}

</mosaic_0001>

<bundles_post_ra>
// kernel: tpu_custom_call.1
= control target key start
LH: loop header
LB: loop body
LE: loop exit
PB: predicated region body
PF: predicated region fallthrough
CT: control target
= control target key end

     0   :  { %s5601_s0 = inlined_call_operand.vmem [shape: f32[2,260,32], index: 0, kind: input, shape index: {}]   ;;  %s5602_s1 = inlined_call_operand.vmem [shape: f32[2,2,1,128], index: 1, kind: input, shape index: {}]   ;;  %s5603_s2 = inlined_call_operand.vmem [shape: f32[3,32,32], index: 2, kind: input, shape index: {}]   ;;  %s5604_s3 = inlined_call_operand.vmem [shape: f32[1,32], index: 3, kind: input, shape index: {}]   ;;  %s5605_s4 = inlined_call_operand.vmem [shape: f32[1,32], index: 4, kind: input, shape index: {}]   ;;  %s5606_s5 = inlined_call_operand.vmem [shape: f32[1,32], index: 5, kind: input, shape index: {}]   ;;  %s5607_s6 = inlined_call_operand.vmem [shape: f32[3,32,32], index: 6, kind: input, shape index: {}]   ;;  %s5608_s7 = inlined_call_operand.vmem [shape: f32[1,32], index: 7, kind: input, shape index: {}]   ;;  %s5609_s8 = inlined_call_operand.vmem [shape: f32[1,32], index: 8, kind: input, shape index: {}]   ;;  %s5610_s9 = inlined_call_operand.vmem [shape: f32[1,32], index: 9, kind: input, shape index: {}]   ;;  %s5611_s10 = inlined_call_operand.vmem [shape: f32[1,32], index: 10, kind: input, shape index: {}]   ;;  %s5612_s11 = inlined_call_operand.<no memory space> [shape: f32[1,1], index: 11, kind: input, shape index: {}]   ;;  %s5613_s12 = inlined_call_operand.hbm [shape: f32[2,2,1,128], index: 12, kind: output, shape index: {}]  }
   0x1   :  { %v17_v0 = vstv %s5612_s11 }
   0x2   :  { %18 = vst [vmem:[#allocation2] sm:$0x1] %v17_v0 }
   0x3   :  { %19 = vsyncpa [#allocation4], 0 }
   0x4   :  { %21 = vsyncpa [#allocation4 + $0x1], 0  ;;  %s3970_s23 = smov 0   ;;  %s3972_s24 = smov 0  }
   0x5   :  { %s3974_s25 = smov 0   ;;  %s3976_s26 = smov 0  }
   0x6   :  { %s3978_s27 = smov 0   ;;  %s3980_s28 = smov 0  }
   0x7   :  { %s3982_s29 = smov 0   ;;  %s3984_s30 = smov 0  }
   0x8 LB: > { %5618 = sst [smem:[#allocation6_spill]] %s3867_s23  ;;  %s3060_s11 = sadd.s32 4294967295, %s3895_s30   ;;  %s3895_s30 = sphi %s3984_s30, %s27_s30   ;;  %s3891_s29 = sphi %s3982_s29, %s5644_s29   ;;  %s3887_s28 = sphi %s3980_s28, %s5639_s28   ;;  %s3883_s27 = sphi %s3978_s27, %s5643_s27   ;;  %s3879_s26 = sphi %s3976_s26, %s5638_s26   ;;  %s3875_s25 = sphi %s3974_s25, %s5642_s25   ;;  %s3871_s24 = sphi %s3972_s24, %s5641_s24   ;;  %s3867_s23 = sphi %s3970_s23, %s5640_s23  }
   0x9   : > { %5619 = sst [smem:[#allocation7_spill]] %s3887_s28  ;;  %s3061_s13 = sadd.s32 4294967294, %s3895_s30  }
   0xa   : > { %s36_s14 = sadd.s32 1, %s3887_s28  ;;  %s39_s15 = sadd.s32 1, %s3891_s29 }
   0xb   : > { %p37_p0 = scmp.ge.s32.totalorder %s36_s14, 2  ;;  %p322_p1 = scmp.ne.s32.totalorder %s3875_s25, %s3871_s24 }
   0xc   : > { %p323_p2 = scmp.eq.s32.totalorder %s3060_s11, 3  ;;  %p328_p5 = scmp.ne.s32.totalorder %s3871_s24, %s3867_s23 }
   0xd   : > { %s5646_s14 = smov (%p37_p0, %s36_s14), 0  ;;  %s5648_s15 = smov (!%p37_p0, %s39_s15), %s3891_s29 }
   0xe   : > { %5620 = sst [smem:[#allocation8_spill]] %s5646_s14  ;;  %s308_s16 = ssub.s32 %s3887_s28, %s5646_s14 }
   0xf   : > { %p4021_p3 = por %p323_p2, %p322_p1  ;;  %p41_p4 = scmp.ge.s32.totalorder %s5648_s15, 2 }
  0x10   : > { %p329_p6 = scmp.eq.s32.totalorder %s3061_s13, 3  ;;  %p3064_p7 = scmp.ge.s32.totalorder %s3895_s30, 1 }
  0x11   : > { %s5650_s15 = smov (%p41_p4, %s5648_s15), 0  ;;  %p395_p9 = scmp.lt.s32.totalorder %s3895_s30, 5 }
  0x12   : > { %p4030_p8 = por %p329_p6, %p328_p5  ;;  %s307_s19 = ssub.s32 %s3891_s29, %s5650_s15 }
  0x13   : > { %s312_s20 = sadd.s32 1, %s3875_s25  ;;  %s309_s21 = sor.u32 %s308_s16, %s307_s19 }
  0x14   : > { %s5622_s18 = scalar_select %p4030_p8, 1, 0 }
  0x15   : > { %p396_p10 = pnand %p3064_p7, %p395_p9  ;;  %p310_p11 = scmp.eq.s32.totalorder %s309_s21, 0 }
  0x16   : > { %5623 = sst [smem:[#allocation9_spill]] %s5622_s18  ;;  %v478_v1 = vld [vmem:[%s5603_s2 + $0x20] sm:$0xff] (!%p396_p10)  ;;  %v479_v2 = vld [vmem:[%s5603_s2 + $0x28] sm:$0xff] (!%p396_p10)  ;;  %v480_v3 = vld [vmem:[%s5603_s2 + $0x30] sm:$0xff] (!%p396_p10)  ;;  %v3897_v4 = vmov (!%p396_p10), 0.0|0.0   ;;  %vm3898_vm0 = vmmov (!%p396_p10), 0  }
  0x17   : > { %s4039_s22 = scalar_select %p310_p11, %s3875_s25, %s312_s20  }
  0x18   : > { %399 = sbr.rel (%p396_p10) target bundleno = 1353 (0x549), region = 68  ;;  %3576 = vmatprep.subr.bf16.mxu0 (!%p396_p10), %v3897_v4  ;;  %v3577_v5 = vpack.c.bf16 (!%p396_p10), %v479_v2, %v478_v1  ;;  %v481_v6 = vld [vmem:[%s5603_s2 + $0x38] sm:$0xff] (!%p396_p10)  ;;  %v3899_v7 = vmov (!%p396_p10), 0.0   ;;  %p443_p12 = scmp.lt.s32.totalorder (!%p396_p10), %s3883_s27, 1  ;;  %v474_v8 = vld [vmem:[%s5603_s2] sm:$0xff] (!%p396_p10)  ;;  %v475_v9 = vld [vmem:[%s5603_s2 + $0x8] sm:$0xff] (!%p396_p10)  ;;  %3618 = vmatprep.subr.bf16.mxu1 (!%p396_p10), %v3897_v4 }
  0x19   : > { %3311 = vmatprep.mubr.msk.f32.mxu0 (!%p396_p10), %vm3898_vm0, %v3899_v7  ;;  %v476_v10 = vld [vmem:[%s5603_s2 + $0x10] sm:$0xff] (!%p396_p10)  ;;  %v477_v11 = vld [vmem:[%s5603_s2 + $0x18] sm:$0xff] (!%p396_p10)  ;;  %3379 = vmatprep.mubr.msk.f32.mxu1 (!%p396_p10), %vm3898_vm0, %v3899_v7  ;;  %v3580_v12 = vpack.c.bf16 (!%p396_p10), %v481_v6, %v480_v3  ;;  %v3583_v13 = vpack.c.bf16 (!%p396_p10), %v475_v9, %v474_v8  ;;  %s3067_s28 = sshll.u32 (!%p396_p10), %s3879_s26, 7  ;;  %vm503_vm1 = vcmask (!%p396_p10), 1046528   ;;  %vm537_vm2 = vcmask (!%p396_p10), 261120   ;;  %p450_p13 = scmp.lt.s32.totalorder (!%p396_p10), %s3879_s26, 1 }
  0x1a   : > { %3578 = vmatpush3.bf16.msra.mxu0 (!%p396_p10), %v3577_v5  ;;  %v3586_v14 = vpack.c.bf16 (!%p396_p10), %v477_v11, %v476_v10  ;;  %vm906_vm3 = vcmask (!%p396_p10), 1045504   ;;  %vm1232_vm4 = vcmask (!%p396_p10), 254976   ;;  %s3176_s21 = sshll.u32 (!%p396_p10), %s3883_s27, 1 }
  0x1b   : > { %3579 = vmatprep.subr.bf16.mxu0 (!%p396_p10), %v3897_v4  ;;  %3620 = vmatpush3.bf16.msra.mxu1 (!%p396_p10), %v3583_v13  ;;  %s2971_s11 = sadd.s32 (!%p396_p10), %s3879_s26, %s3176_s21 }
  0x1c   : > { %3619 = vmatprep.subr.bf16.mxu1 (!%p396_p10), %v3897_v4 }
  0x1e   : > { %3581 = vmatpush3.bf16.msra.mxu0 (!%p396_p10), %v3580_v12 }
  0x1f   : > { %s4073_s16 = scalar_select %p443_p12, %s3883_s27, 1  ;;  %3582 = vmatprep.subr.bf16.mxu0 %v3897_v4  ;;  %3621 = vmatpush3.bf16.msra.mxu1 %v3586_v14 }
  0x20   : > { %s3177_s27 = sshll.u32 %s2971_s11, 4 }
  0x21   : > { %s3654_s19 = smul.u32 264, %s4073_s16  ;;  %s3066_s13 = sshll.u32 %s4073_s16, 1 }
  0x23   : > { %s447_s18 = scalar_lea.vmem %s5601_s0, %s3654_s19 }
  0x24   : > { %s4085_s20 = scalar_lea.vmem %s447_s18, %s3067_s28  ;;  %s3122_s18 = sadd.s32 4294967295, %s3067_s28 }
  0x25   : > { %v4088_v15 = vld [vmem:[%s4085_s20] sm:$0xff]  ;;  %v4091_v16 = vld [vmem:[%s4085_s20 + $0x8] sm:$0xff]  ;;  %v4094_v17 = vld [vmem:[%s4085_s20 + $0x10] sm:$0xff]  ;;  %s451_s19 = scalar_select %p450_p13, %s3879_s26, 1 }
  0x26   : > { %v504_v18 = vrot.slane %v4088_v15, 1  ;;  %v505_v19 = vrot.slane %v4091_v16, 1  ;;  %v507_v20 = vrot.slane %v4094_v17, 1  ;;  %v4100_v21 = vld [vmem:[%s4085_s20 + $0x18] sm:$0xff]  ;;  %v461_v25 = vld [vmem:[%s4085_s20 + $0x20] sm:$0xff]  ;;  %v4117_v27 = vld [vmem:[%s4085_s20 + $0x28] sm:$0xff] }
  0x27   : > { %3380 = vmatmul.mubr.msk.f32.vlgmr.msra.gmra.mrb[0].mxu1 %vm537_vm2, %v4100_v21  ;;  %v509_v24 = vrot.slane %v4100_v21, 1  ;;  %v511_v26 = vrot.slane %v461_v25, 1  ;;  %v4125_v29 = vld [vmem:[%s4085_s20 + $0x30] sm:$0xff]  ;;  %v4128_v30 = vld [vmem:[%s4085_s20 + $0x38] sm:$0xff]  ;;  %v912_v31 = vrot.slane %v4100_v21, 2  ;;  %v914_v32 = vrot.slane %v461_v25, 2  ;;  %s453_s16 = sadd.s32 %s3066_s13, %s451_s19  ;;  %s5546_s19 = scalar_lea.hbm %s5613_s12, %s3177_s27 }
  0x28   : > { %v506_v22 = vsel %vm503_vm1, %v504_v18, %v505_v19  ;;  %3382 = vmatprep.mubr.msk.f32.mxu1 %vm3898_vm0, %v3899_v7  ;;  %v508_v23 = vsel %vm503_vm1, %v505_v19, %v507_v20  ;;  %v513_v33 = vrot.slane %v4117_v27, 1  ;;  %v4136_v34 = vld [vmem:[%s4085_s20 + $0x40] sm:$0xff]  ;;  %v4139_v35 = vld [vmem:[%s4085_s20 + $0x48] sm:$0xff]  ;;  %v916_v36 = vrot.slane %v4117_v27, 2  ;;  %v4149_v40 = vld [vmem:[%s4085_s20 + $0x50] sm:$0xff]  ;;  %s4815_s13 = scalar_lea.vmem %s5602_s1, %s453_s16 }
  0x29   : > { %3312 = vmatmul.mubr.msk.f32.vlgmr.msra.gmra.mrb[0].mxu0 %vm537_vm2, %v506_v22  ;;  %v510_v28 = vsel %vm503_vm1, %v507_v20, %v509_v24  ;;  %v918_v37 = vrot.slane %v4125_v29, 2  ;;  %v920_v38 = vrot.slane %v4128_v30, 2  ;;  %v512_v39 = vsel %vm503_vm1, %v509_v24, %v511_v26  ;;  %v4161_v44 = vld [vmem:[%s4085_s20 + $0x58] sm:$0xff]  ;;  %v4164_v45 = vld [vmem:[%s4085_s20 + $0x60] sm:$0xff]  ;;  %v4177_v50 = vld [vmem:[%s4085_s20 + $0x68] sm:$0xff] }
  0x2a   : > { %3584 = vmatpush3.bf16.msra.mxu0 %v3583_v13  ;;  %3314 = vmatprep.mubr.msk.f32.mxu0 %vm3898_vm0, %v3899_v7  ;;  %v4154_v41 = vsel %vm906_vm3, %v912_v31, %v914_v32  ;;  %v922_v42 = vrot.slane %v4136_v34, 2  ;;  %v924_v43 = vrot.slane %v4139_v35, 2  ;;  %v4167_v46 = vsel %vm906_vm3, %v914_v32, %v916_v36  ;;  %v4180_v51 = vld [vmem:[%s4085_s20 + $0x70] sm:$0xff]  ;;  %v4183_v52 = vld [vmem:[%s4085_s20 + $0x78] sm:$0xff]  ;;  %v4196_v57 = vld [vmem:[%s4085_s20 + $0x80] sm:$0xf] }
  0x2b   : > { %3585 = vmatprep.subr.bf16.mxu0 %v3897_v4  ;;  %3383 = vmatmul.mubr.msk.f32.gmra.mrb[2].mxu1 %vm537_vm2, %v461_v25  ;;  %v4170_v47 = vsel %vm906_vm3, %v916_v36, %v918_v37  ;;  %v4173_v48 = vsel %vm906_vm3, %v918_v37, %v920_v38  ;;  %v926_v49 = vrot.slane %v4149_v40, 2  ;;  %v928_v55 = vrot.slane %v4161_v44, 2  ;;  %v483_v36 = vld [vmem:[%s5603_s2 + $0x48] sm:$0xff] }
  0x2c   : > { %3385 = vmatprep.mubr.msk.f32.mxu1 %vm3898_vm0, %v3899_v7  ;;  %v4186_v53 = vsel %vm906_vm3, %v920_v38, %v922_v42  ;;  %v4189_v54 = vsel %vm906_vm3, %v922_v42, %v924_v43  ;;  %v930_v56 = vrot.slane %v4164_v45, 2  ;;  %v932_v59 = vrot.slane %v4177_v50, 2  ;;  %v484_v38 = vld [vmem:[%s5603_s2 + $0x50] sm:$0xff] }
  0x2d   : > { %3315 = vmatmul.mubr.msk.f32.gmra.mrb[2].mxu0 %vm537_vm2, %v508_v23  ;;  %v4199_v58 = vsel %vm906_vm3, %v924_v43, %v926_v49  ;;  %v934_v60 = vrot.slane %v4180_v51, 2  ;;  %v936_v61 = vrot.slane %v4183_v52, 2  ;;  %v515_v62 = vrot.slane %v4125_v29, 1 }
  0x2e   : > { %3317 = vmatprep.mubr.msk.f32.mxu0 %vm3898_vm0, %v3899_v7  ;;  %3587 = vmatpush3.bf16.msra.mxu0 %v3586_v14  ;;  %v4209_v63 = vsel %vm906_vm3, %v926_v49, %v928_v55  ;;  %v4212_v0 = vsel %vm906_vm3, %v928_v55, %v930_v56  ;;  %v938_v1 = vrot.slane %v4196_v57, 2  ;;  %v514_v2 = vsel %vm503_vm1, %v511_v26, %v513_v33 }
  0x2f   : > { %3588 = vmatprep.subr.bf16.mxu0 %v3897_v4  ;;  %3386 = vmatmul.mubr.msk.f32.gmra.mrb[4].mxu1 %vm537_vm2, %v4117_v27  ;;  %v4219_v3 = vsel %vm906_vm3, %v930_v56, %v932_v59  ;;  %v4222_v5 = vsel %vm906_vm3, %v932_v59, %v934_v60  ;;  %v4225_v6 = vsel %vm906_vm3, %v934_v60, %v936_v61  ;;  %v517_v10 = vrot.slane %v4128_v30, 1 }
  0x30   : > { %3388 = vmatprep.mubr.msk.f32.mxu1 %vm3898_vm0, %v3899_v7  ;;  %v4230_v8 = vsel %vm906_vm3, %v936_v61, %v938_v1  ;;  %v516_v9 = vsel %vm503_vm1, %v513_v33, %v515_v62  ;;  %v519_v12 = vrot.slane %v4136_v34, 1  ;;  %v521_v14 = vrot.slane %v4139_v35, 1 }
  0x31   : > { %3318 = vmatmul.mubr.msk.f32.gmra.mrb[4].mxu0 %vm537_vm2, %v510_v28  ;;  %v518_v11 = vsel %vm503_vm1, %v515_v62, %v517_v10  ;;  %v523_v19 = vrot.slane %v4149_v40, 1  ;;  %v525_v22 = vrot.slane %v4161_v44, 1  ;;  %v527_v24 = vrot.slane %v4164_v45, 1 }
  0x32   : > { %3320 = vmatprep.mubr.msk.f32.mxu0 %vm3898_vm0, %v3899_v7  ;;  %v520_v13 = vsel %vm503_vm1, %v517_v10, %v519_v12  ;;  %v522_v18 = vsel %vm503_vm1, %v519_v12, %v521_v14  ;;  %v529_v26 = vrot.slane %v4177_v50, 1  ;;  %v531_v28 = vrot.slane %v4180_v51, 1 }
  0x33   : > { %3389 = vmatmul.mubr.msk.f32.gmra.mrb[6].mxu1 %vm537_vm2, %v4125_v29  ;;  %v524_v20 = vsel %vm503_vm1, %v521_v14, %v523_v19  ;;  %v526_v23 = vsel %vm503_vm1, %v523_v19, %v525_v22  ;;  %v528_v25 = vsel %vm503_vm1, %v525_v22, %v527_v24  ;;  %v535_v33 = vrot.slane %v4196_v57, 1 }
  0x34   : > { %3391 = vmatprep.mubr.msk.f32.mxu1 %vm3898_vm0, %v3899_v7  ;;  %v530_v27 = vsel %vm503_vm1, %v527_v24, %v529_v26  ;;  %v532_v29 = vsel %vm503_vm1, %v529_v26, %v531_v28  ;;  %v907_v42 = vrot.slane %v4088_v15, 2  ;;  %v908_v43 = vrot.slane %v4091_v16, 2 }
  0x35   : > { %3321 = vmatmul.mubr.msk.f32.gmra.mrb[6].mxu0 %vm537_vm2, %v512_v39  ;;  %v485_v39 = vld [vmem:[%s5603_s2 + $0x58] sm:$0xff] }
  0x36   : > { %3323 = vmatprep.mubr.msk.f32.mxu0 %vm3898_vm0, %v3899_v7 }
  0x37   : > { %3392 = vmatmul.mubr.msk.f32.gmra.mrb[8].mxu1 %vm537_vm2, %v4128_v30  ;;  %v533_v30 = vrot.slane %v4183_v52, 1 }
  0x38   : > { %3394 = vmatprep.mubr.msk.f32.mxu1 %vm3898_vm0, %v3899_v7 }
  0x39   : > { %3324 = vmatmul.mubr.msk.f32.gmra.mrb[8].mxu0 %vm537_vm2, %v514_v2  ;;  %v534_v32 = vsel %vm503_vm1, %v531_v28, %v533_v30 }
  0x3a   : > { %3326 = vmatprep.mubr.msk.f32.mxu0 %vm3898_vm0, %v3899_v7 }
  0x3b   : > { %3395 = vmatmul.mubr.msk.f32.gmra.mrb[10].mxu1 %vm537_vm2, %v4136_v34  ;;  %v536_v34 = vsel %vm503_vm1, %v533_v30, %v535_v33 }
  0x3c   : > { %3397 = vmatprep.mubr.msk.f32.mxu1 %vm3898_vm0, %v3899_v7 }
  0x3d   : > { %3327 = vmatmul.mubr.msk.f32.gmra.mrb[10].mxu0 %vm537_vm2, %v516_v9 }
  0x3e   : > { %3329 = vmatprep.mubr.msk.f32.mxu0 %vm3898_vm0, %v3899_v7 }
  0x3f   : > { %3398 = vmatmul.mubr.msk.f32.gmra.mrb[12].mxu1 %vm537_vm2, %v4139_v35  ;;  %v482_v35 = vld [vmem:[%s5603_s2 + $0x40] sm:$0xff] }
  0x40   : > { %3400 = vmatprep.mubr.msk.f32.mxu1 %vm3898_vm0, %v3899_v7  ;;  %v3589_v37 = vpack.c.bf16 %v483_v36, %v482_v35 }
  0x41   : > { %3330 = vmatmul.mubr.msk.f32.gmra.mrb[12].mxu0 %vm537_vm2, %v518_v11 }
  0x42   : > { %3332 = vmatprep.mubr.msk.f32.mxu0 %vm3898_vm0, %v3899_v7 }
  0x43   : > { %3401 = vmatmul.mubr.msk.f32.gmra.mrb[14].mxu1 %vm537_vm2, %v4149_v40  ;;  %v3592_v40 = vpack.c.bf16 %v485_v39, %v484_v38 }
  0x44   : > { %3403 = vmatprep.mubr.msk.f32.mxu1 %vm3898_vm0, %v3899_v7 }
  0x45   : > { %3333 = vmatmul.mubr.msk.f32.gmra.mrb[14].mxu0 %vm537_vm2, %v520_v13 }
  0x46   : > { %3335 = vmatprep.mubr.msk.f32.mxu0 %vm3898_vm0, %v3899_v7 }
  0x47   : > { %3404 = vmatmul.mubr.msk.f32.gmra.mrb[16].mxu1 %vm537_vm2, %v4161_v44  ;;  %v909_v44 = vsel %vm906_vm3, %v907_v42, %v908_v43 }
  0x48   : > { %3406 = vmatprep.mubr.msk.f32.mxu1 %vm3898_vm0, %v3899_v7 }
  0x49   : > { %3336 = vmatmul.mubr.msk.f32.gmra.mrb[16].mxu0 %vm537_vm2, %v522_v18 }
  0x4a   : > { %3338 = vmatprep.mubr.msk.f32.mxu0 %vm3898_vm0, %v3899_v7 }
  0x4b   : > { %3407 = vmatmul.mubr.msk.f32.gmra.mrb[18].mxu1 %vm537_vm2, %v4164_v45 }
  0x4c   : > { %3409 = vmatprep.mubr.msk.f32.mxu1 %vm3898_vm0, %v3899_v7 }
  0x4d   : > { %3339 = vmatmul.mubr.msk.f32.gmra.mrb[18].mxu0 %vm537_vm2, %v524_v20 }
  0x4e   : > { %3341 = vmatprep.mubr.msk.f32.mxu0 %vm3898_vm0, %v3899_v7 }
  0x4f   : > { %3410 = vmatmul.mubr.msk.f32.gmra.mrb[20].mxu1 %vm537_vm2, %v4177_v50 }
  0x50   : > { %3412 = vmatprep.mubr.msk.f32.mxu1 %vm3898_vm0, %v3899_v7 }
  0x51   : > { %3342 = vmatmul.mubr.msk.f32.gmra.mrb[20].mxu0 %vm537_vm2, %v526_v23 }
  0x52   : > { %3344 = vmatprep.mubr.msk.f32.mxu0 %vm3898_vm0, %v3899_v7 }
  0x53   : > { %3413 = vmatmul.mubr.msk.f32.gmra.mrb[22].mxu1 %vm537_vm2, %v4180_v51 }
  0x54   : > { %3415 = vmatprep.mubr.msk.f32.mxu1 %vm3898_vm0, %v3899_v7 }
  0x55   : > { %3345 = vmatmul.mubr.msk.f32.gmra.mrb[22].mxu0 %vm537_vm2, %v528_v25 }
  0x56   : > { %3347 = vmatprep.mubr.msk.f32.mxu0 %vm3898_vm0, %v3899_v7 }
  0x57   : > { %3416 = vmatmul.mubr.msk.f32.gmra.mrb[24].mxu1 %vm537_vm2, %v4183_v52 }
  0x58   : > { %3418 = vmatprep.mubr.msk.f32.mxu1 %vm3898_vm0, %v3899_v7 }
  0x59   : > { %3348 = vmatmul.mubr.msk.f32.gmra.mrb[24].mxu0 %vm537_vm2, %v530_v27 }
  0x5a   : > { %3350 = vmatprep.mubr.msk.f32.mxu0 %vm3898_vm0, %v3899_v7 }
  0x5b   : > { %3419 = vmatmul.mubr.msk.f32.gmra.mrb[26].mxu1 %vm537_vm2, %v4196_v57 }
  0x5d   : > { %3351 = vmatmul.mubr.msk.f32.gmra.mrb[26].mxu0 %vm537_vm2, %v532_v29 }
  0x5e   : > { %3353 = vmatprep.mubr.msk.f32.mxu0 %vm3898_vm0, %v3899_v7 }
  0x61   : > { %3354 = vmatmul.mubr.msk.f32.gmra.mrb[28].mxu0 %vm537_vm2, %v534_v32 }
  0x62   : > { %3356 = vmatprep.mubr.msk.f32.mxu0 %vm3898_vm0, %v3899_v7 }
  0x65   : > { %3357 = vmatmul.mubr.msk.f32.gmra.mrb[30].mxu0 %vm537_vm2, %v536_v34 }
  0x66   : > { %3359 = vmatprep.mubr.msk.f32.mxu0 %vm3898_vm0, %v3899_v7 }
  0x69   : > { %3360 = vmatmul.mubr.msk.f32.gmra.mrb[32].mxu0 %vm537_vm2, %v535_v33 }
  0x6a   : > { %3370 = vmatprep.mubr.msk.f32.mxu0 %vm3898_vm0, %v3899_v7 }
  0x6d   : > { %3371 = vmatmul.mubr.msk.f32.vlgmr.msra.gmra.mrb[34].mxu0 %vm537_vm2, %v4088_v15 }
  0x6e   : > { %3590 = vmatpush3.bf16.msra.mxu0 %v3589_v37  ;;  %3373 = vmatprep.mubr.msk.f32.mxu0 %vm3898_vm0, %v3899_v7 }
  0x6f   : > { %3591 = vmatprep.subr.bf16.mxu0 %v3897_v4  ;;  %v910_v4 = vrot.slane %v4094_v17, 2 }
  0x71   : > { %3374 = vmatmul.mubr.msk.f32.gmra.mrb[36].mxu0 %vm537_vm2, %v4091_v16  ;;  %v911_v15 = vsel %vm906_vm3, %v908_v43, %v910_v4  ;;  %v913_v16 = vsel %vm906_vm3, %v910_v4, %v912_v31 }
  0x72   : > { %3593 = vmatpush3.bf16.msra.mxu0 %v3592_v40  ;;  %3376 = vmatprep.mubr.msk.f32.mxu0 %vm3898_vm0, %v3899_v7 }
  0x75   : > { %3377 = vmatmul.mubr.msk.f32.gmra.mrb[38].mxu0 %vm537_vm2, %v4094_v17 }
  0x76   : > { %3429 = vmatprep.mubr.msk.f32.mxu0 %vm3898_vm0, %v3899_v7 }
  0x79   : > { %3430 = vmatmul.mubr.msk.f32.vlgmr.msra.gmra.mrb[40].mxu0 %vm537_vm2, %v909_v44 }
  0x7a   : > { %3432 = vmatprep.mubr.msk.f32.mxu0 %vm3898_vm0, %v3899_v7 }
  0x7d   : > { %3433 = vmatmul.mubr.msk.f32.gmra.mrb[42].mxu0 %vm537_vm2, %v911_v15 }
  0x7e   : > { %3435 = vmatprep.mubr.msk.f32.mxu0 %vm3898_vm0, %v3899_v7 }
  0x81   : > { %3436 = vmatmul.mubr.msk.f32.gmra.mrb[44].mxu0 %vm537_vm2, %v913_v16 }
  0x82   : > { %3438 = vmatprep.mubr.msk.f32.mxu0 %vm3898_vm0, %v3899_v7 }
  0x85   : > { %3439 = vmatmul.mubr.msk.f32.gmra.mrb[46].mxu0 %vm537_vm2, %v4154_v41 }
  0x86   : > { %3441 = vmatprep.mubr.msk.f32.mxu0 %vm3898_vm0, %v3899_v7 }
  0x89   : > { %3442 = vmatmul.mubr.msk.f32.gmra.mrb[48].mxu0 %vm537_vm2, %v4167_v46 }
  0x8a   : > { %3444 = vmatprep.mubr.msk.f32.mxu0 %vm3898_vm0, %v3899_v7 }
  0x8d   : > { %3445 = vmatmul.mubr.msk.f32.gmra.mrb[50].mxu0 %vm537_vm2, %v4170_v47 }
  0x8e   : > { %3447 = vmatprep.mubr.msk.f32.mxu0 %vm3898_vm0, %v3899_v7 }
  0x91   : > { %3448 = vmatmul.mubr.msk.f32.gmra.mrb[52].mxu0 %vm537_vm2, %v4173_v48 }
  0x92   : > { %3450 = vmatprep.mubr.msk.f32.mxu0 %vm3898_vm0, %v3899_v7 }
  0x95   : > { %3451 = vmatmul.mubr.msk.f32.gmra.mrb[54].mxu0 %vm537_vm2, %v4186_v53 }
  0x96   : > { %3453 = vmatprep.mubr.msk.f32.mxu0 %vm3898_vm0, %v3899_v7 }
  0x99   : > { %3454 = vmatmul.mubr.msk.f32.gmra.mrb[56].mxu0 %vm537_vm2, %v4189_v54 }
  0x9a   : > { %3456 = vmatprep.mubr.msk.f32.mxu0 %vm3898_vm0, %v3899_v7 }
  0x9d   : > { %3457 = vmatmul.mubr.msk.f32.gmra.mrb[58].mxu0 %vm537_vm2, %v4199_v58 }
  0x9e   : > { %3459 = vmatprep.mubr.msk.f32.mxu0 %vm3898_vm0, %v3899_v7 }
  0xa1   : > { %3460 = vmatmul.mubr.msk.f32.gmra.mrb[60].mxu0 %vm537_vm2, %v4209_v63 }
  0xa2   : > { %3462 = vmatprep.mubr.msk.f32.mxu0 %vm3898_vm0, %v3899_v7 }
  0xa5   : > { %3463 = vmatmul.mubr.msk.f32.gmra.mrb[62].mxu0 %vm537_vm2, %v4212_v0 }
  0xa6   : > { %3465 = vmatprep.mubr.msk.f32.mxu0 %vm3898_vm0, %v3899_v7 }
  0xa9   : > { %3466 = vmatmul.mubr.msk.f32.gmra.mrb[64].mxu0 %vm537_vm2, %v4219_v3 }
  0xaa   : > { %3468 = vmatprep.mubr.msk.f32.mxu0 %vm3898_vm0, %v3899_v7 }
  0xad   : > { %3469 = vmatmul.mubr.msk.f32.gmra.mrb[66].mxu0 %vm537_vm2, %v4222_v5 }
  0xae   : > { %3471 = vmatprep.mubr.msk.f32.mxu0 %vm3898_vm0, %v3899_v7 }
  0xb1   : > { %3472 = vmatmul.mubr.msk.f32.gmra.mrb[68].mxu0 %vm537_vm2, %v4225_v6 }
  0xb2   : > { %3474 = vmatprep.mubr.msk.f32.mxu0 %vm3898_vm0, %v3899_v7 }
  0xb5   : > { %3475 = vmatmul.mubr.msk.f32.gmra.mrb[70].mxu0 %vm537_vm2, %v4230_v8 }
  0xb6   : > { %3477 = vmatprep.mubr.msk.f32.mxu0 %vm3898_vm0, %v3899_v7 }
  0xb9   : > { %3478 = vmatmul.mubr.msk.f32.gmra.mrb[72].mxu0 %vm537_vm2, %v938_v1 }
  0xfa   : > { %v837_v17 = vpop.f32.mrb[0].mxu1 }
  0xfb   : > { %v3381_v31 = vpop.f32.mrb[1].mxu1 }
  0xfc   : > { %v4427_v21 = vpop.f32.mrb[0].mxu0 }
  0xfd   : > { %v3313_v41 = vpop.f32.mrb[1].mxu0 }
  0xfe   : > { %v842_v45 = vpop.f32.mrb[2].mxu1 }
  0xff   : > { %v3384_v47 = vpop.f32.mrb[3].mxu1 }
 0x100   : > { %v4429_v46 = vpop.f32.mrb[2].mxu0 }
 0x101   : > { %v3316_v48 = vpop.f32.mrb[3].mxu0 }
 0x102   : > { %v847_v49 = vpop.f32.mrb[4].mxu1 }
 0x103   : > { %v3387_v51 = vpop.f32.mrb[5].mxu1 }
 0x104   : > { %v4431_v50 = vpop.f32.mrb[4].mxu0 }
 0x105   : > { %v3319_v52 = vpop.f32.mrb[5].mxu0 }
 0x106   : > { %v852_v7 = vpop.f32.mrb[6].mxu1 }
 0x107   : > { %v3390_v54 = vpop.f32.mrb[7].mxu1 }
 0x108   : > { %v653_v53 = vpop.f32.mrb[6].mxu0 }
 0x109   : > { %v4433_v55 = vadd.f32 %v837_v17, %v653_v53  ;;  %v3322_v56 = vpop.f32.mrb[7].mxu0 }
 0x10a   : > { %v857_v57 = vpop.f32.mrb[8].mxu1 }
 0x10b   : > { %v3393_v59 = vpop.f32.mrb[9].mxu1 }
 0x10c   : > { %v658_v58 = vpop.f32.mrb[8].mxu0 }
 0x10d   : > { %v4435_v60 = vadd.f32 %v842_v45, %v658_v58  ;;  %v3325_v61 = vpop.f32.mrb[9].mxu0 }
 0x10e   : > { %v862_v62 = vpop.f32.mrb[10].mxu1 }
 0x10f   : > { %v3396_v0 = vpop.f32.mrb[11].mxu1 }
 0x110   : > { %v663_v63 = vpop.f32.mrb[10].mxu0 }
 0x111   : > { %v4437_v1 = vadd.f32 %v847_v49, %v663_v63  ;;  %v3328_v2 = vpop.f32.mrb[11].mxu0 }
 0x112   : > { %v867_v3 = vpop.f32.mrb[12].mxu1 }
 0x113   : > { %v3399_v6 = vpop.f32.mrb[13].mxu1 }
 0x114   : > { %v668_v5 = vpop.f32.mrb[12].mxu0 }
 0x115   : > { %v4439_v8 = vadd.f32 %v852_v7, %v668_v5  ;;  %v3331_v9 = vpop.f32.mrb[13].mxu0  ;;  %v4467_v5 = vld [vmem:[%s5604_s3] ss:$0 sm:$0xff] }
 0x116   : > { %v872_v10 = vpop.f32.mrb[14].mxu1 }
 0x117   : > { %v3402_v12 = vpop.f32.mrb[15].mxu1 }
 0x118   : > { %v673_v11 = vpop.f32.mrb[14].mxu0 }
 0x119   : > { %v4441_v13 = vadd.f32 %v857_v57, %v673_v11  ;;  %v3334_v14 = vpop.f32.mrb[15].mxu0 }
 0x11a   : > { %v877_v18 = vpop.f32.mrb[16].mxu1 }
 0x11b   : > { %v3405_v20 = vpop.f32.mrb[17].mxu1 }
 0x11c   : > { %v678_v19 = vpop.f32.mrb[16].mxu0 }
 0x11d   : > { %v4443_v22 = vadd.f32 %v862_v62, %v678_v19  ;;  %v3337_v23 = vpop.f32.mrb[17].mxu0 }
 0x11e   : > { %v882_v24 = vpop.f32.mrb[18].mxu1 }
 0x11f   : > { %v3408_v26 = vpop.f32.mrb[19].mxu1 }
 0x120   : > { %v683_v25 = vpop.f32.mrb[18].mxu0 }
 0x121   : > { %v4445_v27 = vadd.f32 %v867_v3, %v683_v25  ;;  %v3340_v28 = vpop.f32.mrb[19].mxu0 }
 0x122   : > { %v887_v29 = vpop.f32.mrb[20].mxu1 }
 0x123   : > { %v3411_v32 = vpop.f32.mrb[21].mxu1 }
 0x124   : > { %v688_v30 = vpop.f32.mrb[20].mxu0 }
 0x125   : > { %v4447_v33 = vadd.f32 %v872_v10, %v688_v30  ;;  %v3343_v34 = vpop.f32.mrb[21].mxu0 }
 0x126   : > { %v892_v35 = vpop.f32.mrb[22].mxu1 }
 0x127   : > { %v3414_v37 = vpop.f32.mrb[23].mxu1 }
 0x128   : > { %v693_v36 = vpop.f32.mrb[22].mxu0 }
 0x129   : > { %v4449_v38 = vadd.f32 %v877_v18, %v693_v36  ;;  %v3346_v39 = vpop.f32.mrb[23].mxu0 }
 0x12a   : > { %v897_v40 = vpop.f32.mrb[24].mxu1 }
 0x12b   : > { %v3417_v43 = vpop.f32.mrb[25].mxu1 }
 0x12c   : > { %v698_v42 = vpop.f32.mrb[24].mxu0 }
 0x12d   : > { %v4451_v44 = vadd.f32 %v882_v24, %v698_v42  ;;  %v3349_v4 = vpop.f32.mrb[25].mxu0 }
 0x12e   : > { %v902_v15 = vpop.f32.mrb[26].mxu1 }
 0x12f   : > { %v3420_v17 = vpop.f32.mrb[27].mxu1 }
 0x130   : > { %v703_v16 = vpop.f32.mrb[26].mxu0 }
 0x131   : > { %v4453_v31 = vadd.f32 %v887_v29, %v703_v16  ;;  %v3352_v41 = vpop.f32.mrb[27].mxu0 }
 0x134   : > { %v708_v45 = vpop.f32.mrb[28].mxu0 }
 0x135   : > { %v4455_v47 = vadd.f32 %v892_v35, %v708_v45  ;;  %v3355_v48 = vpop.f32.mrb[29].mxu0 }
 0x138   : > { %v713_v49 = vpop.f32.mrb[30].mxu0 }
 0x139   : > { %v4457_v51 = vadd.f32 %v897_v40, %v713_v49  ;;  %v3358_v52 = vpop.f32.mrb[31].mxu0 }
 0x13c   : > { %v718_v7 = vpop.f32.mrb[32].mxu0 }
 0x13d   : > { %v4459_v53 = vadd.f32 %v902_v15, %v718_v7  ;;  %v3361_v54 = vpop.f32.mrb[33].mxu0 }
 0x140   : > { %v822_v56 = vpop.f32.mrb[34].mxu0 }
 0x141   : > { %v823_v57 = vadd.f32 %v822_v56, %v4427_v21  ;;  %v3372_v58 = vpop.f32.mrb[35].mxu0 }
 0x144   : > { %v827_v59 = vpop.f32.mrb[36].mxu0 }
 0x145   : > { %v828_v61 = vadd.f32 %v827_v59, %v4429_v46  ;;  %v3375_v62 = vpop.f32.mrb[37].mxu0 }
 0x148   : > { %v832_v63 = vpop.f32.mrb[38].mxu0 }
 0x149   : > { %v833_v0 = vadd.f32 %v832_v63, %v4431_v50  ;;  %v3378_v2 = vpop.f32.mrb[39].mxu0 }
 0x14c   : > { %v1040_v3 = vpop.f32.mrb[40].mxu0 }
 0x14d   : > { %v1124_v6 = vadd.f32 %v1040_v3, %v823_v57  ;;  %v3431_v9 = vpop.f32.mrb[41].mxu0 }
 0x14f   : > { %v1148_v10 = vadd.f32 %v4467_v5, %v1124_v6 }
 0x150   : > { %v1045_v21 = vpop.f32.mrb[42].mxu0 }
 0x151   : > { %v4470_v11 = vmax.f32 %v1148_v10, 0.0  ;;  %v1125_v12 = vadd.f32 %v1045_v21, %v828_v61  ;;  %v3434_v46 = vpop.f32.mrb[43].mxu0 }
 0x153   : > { %v1149_v14 = vadd.f32 %v4467_v5, %v1125_v12  ;;  %v1184_v50 = vsel %vm537_vm2, %v4470_v11, 0.0  ;;  %v1236_v18 = vmul.f32 %v4470_v11, %v4470_v11 }
 0x154   : > { %1185 = vadd.xlane.f32.xlu0 %v1184_v50  ;;  %v1050_v19 = vpop.f32.mrb[44].mxu0 }
 0x155   : > { %v4477_v20 = vmax.f32 %v1149_v14, 0.0  ;;  %v1126_v23 = vadd.f32 %v1050_v19, %v833_v0  ;;  %v3437_v24 = vpop.f32.mrb[45].mxu0  ;;  %v1253_v25 = vsel %vm537_vm2, %v1236_v18, 0.0 }
 0x156   : > { %1254 = vadd.xlane.f32.xlu1 %v1253_v25 }
 0x157   : > { %v1150_v26 = vadd.f32 %v4467_v5, %v1126_v23  ;;  %v1187_v28 = vsel %vm537_vm2, %v4477_v20, 0.0  ;;  %v1237_v29 = vmul.f32 %v4477_v20, %v4477_v20 }
 0x158   : > { %1188 = vadd.xlane.f32.xlu0 %v1187_v28  ;;  %v1055_v30 = vpop.f32.mrb[46].mxu0 }
 0x159   : > { %v4485_v32 = vmax.f32 %v1150_v26, 0.0  ;;  %v1127_v34 = vadd.f32 %v1055_v30, %v4433_v55  ;;  %v3440_v35 = vpop.f32.mrb[47].mxu0  ;;  %v1256_v37 = vsel %vm537_vm2, %v1237_v29, 0.0 }
 0x15b   : > { %v1151_v36 = vadd.f32 %v4467_v5, %v1127_v34  ;;  %v1190_v39 = vsel %vm537_vm2, %v4485_v32, 0.0  ;;  %v1238_v40 = vmul.f32 %v4485_v32, %v4485_v32 }
 0x15c   : > { %1257 = vadd.xlane.f32.xlu0 %v1256_v37  ;;  %1191 = vadd.xlane.f32.xlu1 %v1190_v39  ;;  %v1060_v42 = vpop.f32.mrb[48].mxu0 }
 0x15d   : > { %v4494_v43 = vmax.f32 %v1151_v36, 0.0  ;;  %v1128_v4 = vadd.f32 %v1060_v42, %v4435_v60  ;;  %v3443_v15 = vpop.f32.mrb[49].mxu0  ;;  %v1259_v16 = vsel %vm537_vm2, %v1238_v40, 0.0 }
 0x15f   : > { %v1152_v55 = vadd.f32 %v4467_v5, %v1128_v4  ;;  %v1193_v17 = vsel %vm537_vm2, %v4494_v43, 0.0  ;;  %v1239_v41 = vmul.f32 %v4494_v43, %v4494_v43 }
 0x160   : > { %1260 = vadd.xlane.f32.xlu1 %v1259_v16  ;;  %1194 = vadd.xlane.f32.xlu0 %v1193_v17  ;;  %v1065_v45 = vpop.f32.mrb[50].mxu0 }
 0x161   : > { %v4503_v48 = vmax.f32 %v1152_v55, 0.0  ;;  %v1129_v49 = vadd.f32 %v1065_v45, %v4437_v1  ;;  %v3446_v52 = vpop.f32.mrb[51].mxu0  ;;  %v1262_v7 = vsel %vm537_vm2, %v1239_v41, 0.0 }
 0x163   : > { %v1153_v60 = vadd.f32 %v4467_v5, %v1129_v49  ;;  %v1196_v54 = vsel %vm537_vm2, %v4503_v48, 0.0  ;;  %v1240_v56 = vmul.f32 %v4503_v48, %v4503_v48 }
 0x164   : > { %1263 = vadd.xlane.f32.xlu0 %v1262_v7  ;;  %1197 = vadd.xlane.f32.xlu1 %v1196_v54  ;;  %v1070_v57 = vpop.f32.mrb[52].mxu0  ;;  %v1630_v7 = vld [vmem:[%s5607_s6 + $0x28] sm:$0xff] }
 0x165   : > { %v4512_v58 = vmax.f32 %v1153_v60, 0.0  ;;  %v1130_v59 = vadd.f32 %v1070_v57, %v4439_v8  ;;  %v3449_v61 = vpop.f32.mrb[53].mxu0  ;;  %v1265_v62 = vsel %vm537_vm2, %v1240_v56, 0.0  ;;  %v1629_v60 = vld [vmem:[%s5607_s6 + $0x20] sm:$0xff] }
 0x166   : > { %v3594_v54 = vpack.c.bf16 %v1630_v7, %v1629_v60 }
 0x167   : > { %v1154_v1 = vadd.f32 %v4467_v5, %v1130_v59  ;;  %v1199_v63 = vsel %vm537_vm2, %v4512_v58, 0.0  ;;  %v1241_v0 = vmul.f32 %v4512_v58, %v4512_v58 }
 0x168   : > { %1266 = vadd.xlane.f32.xlu1 %v1265_v62  ;;  %1200 = vadd.xlane.f32.xlu0 %v1199_v63  ;;  %v1075_v2 = vpop.f32.mrb[54].mxu0 }
 0x169   : > { %v4521_v3 = vmax.f32 %v1154_v1, 0.0  ;;  %v1131_v6 = vadd.f32 %v1075_v2, %v4441_v13  ;;  %v3452_v9 = vpop.f32.mrb[55].mxu0  ;;  %v1268_v10 = vsel %vm537_vm2, %v1241_v0, 0.0  ;;  %3595 = vmatprep.subr.bf16.mxu1 %v3594_v54 }
 0x16a   : > { %3597 = vmatpush3.bf16.msra.mxu1 %v3594_v54 }
 0x16b   : > { %v1155_v8 = vadd.f32 %v4467_v5, %v1131_v6  ;;  %v1202_v21 = vsel %vm537_vm2, %v4521_v3, 0.0  ;;  %v1242_v12 = vmul.f32 %v4521_v3, %v4521_v3 }
 0x16c   : > { %1269 = vadd.xlane.f32.xlu0 %v1268_v10  ;;  %1203 = vadd.xlane.f32.xlu1 %v1202_v21  ;;  %v1080_v46 = vpop.f32.mrb[56].mxu0  ;;  %v1632_v10 = vld [vmem:[%s5607_s6 + $0x38] sm:$0xff] }
 0x16d   : > { %v4530_v14 = vmax.f32 %v1155_v8, 0.0  ;;  %v1132_v50 = vadd.f32 %v1080_v46, %v4443_v22  ;;  %v3455_v18 = vpop.f32.mrb[57].mxu0  ;;  %v1271_v19 = vsel %vm537_vm2, %v1242_v12, 0.0  ;;  %v1631_v8 = vld [vmem:[%s5607_s6 + $0x30] sm:$0xff] }
 0x16f   : > { %v1156_v13 = vadd.f32 %v4467_v5, %v1132_v50  ;;  %v1205_v23 = vsel %vm537_vm2, %v4530_v14, 0.0  ;;  %v1243_v24 = vmul.f32 %v4530_v14, %v4530_v14 }
 0x170   : > { %1272 = vadd.xlane.f32.xlu1 %v1271_v19  ;;  %1206 = vadd.xlane.f32.xlu0 %v1205_v23  ;;  %v1085_v25 = vpop.f32.mrb[58].mxu0 }
 0x171   : > { %v4539_v26 = vmax.f32 %v1156_v13, 0.0  ;;  %v1133_v28 = vadd.f32 %v1085_v25, %v4445_v27  ;;  %v3458_v29 = vpop.f32.mrb[59].mxu0  ;;  %v1274_v30 = vsel %vm537_vm2, %v1243_v24, 0.0 }
 0x173   : > { %v1157_v22 = vadd.f32 %v4467_v5, %v1133_v28  ;;  %v1208_v34 = vsel %vm537_vm2, %v4539_v26, 0.0  ;;  %v1244_v35 = vmul.f32 %v4539_v26, %v4539_v26 }
 0x174   : > { %1275 = vadd.xlane.f32.xlu0 %v1274_v30  ;;  %1209 = vadd.xlane.f32.xlu1 %v1208_v34  ;;  %v1090_v36 = vpop.f32.mrb[60].mxu0 }
 0x175   : > { %v4548_v37 = vmax.f32 %v1157_v22, 0.0  ;;  %v1134_v39 = vadd.f32 %v1090_v36, %v4447_v33  ;;  %v3461_v40 = vpop.f32.mrb[61].mxu0  ;;  %v1277_v42 = vsel %vm537_vm2, %v1244_v35, 0.0 }
 0x177   : > { %v1158_v27 = vadd.f32 %v4467_v5, %v1134_v39  ;;  %v1211_v4 = vsel %vm537_vm2, %v4548_v37, 0.0  ;;  %v1245_v15 = vmul.f32 %v4548_v37, %v4548_v37 }
 0x178   : > { %1278 = vadd.xlane.f32.xlu1 %v1277_v42  ;;  %1212 = vadd.xlane.f32.xlu0 %v1211_v4  ;;  %v1095_v55 = vpop.f32.mrb[62].mxu0 }
 0x179   : > { %v4557_v16 = vmax.f32 %v1158_v27, 0.0  ;;  %v1135_v17 = vadd.f32 %v1095_v55, %v4449_v38  ;;  %v3464_v41 = vpop.f32.mrb[63].mxu0  ;;  %v1280_v45 = vsel %vm537_vm2, %v1245_v15, 0.0 }
 0x17b   : > { %v1159_v33 = vadd.f32 %v4467_v5, %v1135_v17  ;;  %v1214_v49 = vsel %vm537_vm2, %v4557_v16, 0.0  ;;  %v1246_v52 = vmul.f32 %v4557_v16, %v4557_v16 }
 0x17c   : > { %1281 = vadd.xlane.f32.xlu0 %v1280_v45  ;;  %1215 = vadd.xlane.f32.xlu1 %v1214_v49  ;;  %v1100_v38 = vpop.f32.mrb[64].mxu0  ;;  %v1625_v49 = vld [vmem:[%s5607_s6] sm:$0xff] }
 0x17d   : > { %v4572_v56 = vmax.f32 %v1159_v33, 0.0  ;;  %v1136_v57 = vadd.f32 %v1100_v38, %v4451_v44  ;;  %v3467_v59 = vpop.f32.mrb[65].mxu0  ;;  %v1283_v1 = vsel %vm537_vm2, %v1246_v52, 0.0  ;;  %v1626_v52 = vld [vmem:[%s5607_s6 + $0x8] sm:$0xff] }
 0x17e   : > { %v4635_v60 = vpack.c.bf16 %v1626_v52, %v1625_v49 }
 0x17f   : > { %v1160_v61 = vadd.f32 %v4467_v5, %v1136_v57  ;;  %v1217_v62 = vsel %vm537_vm2, %v4572_v56, 0.0  ;;  %v1247_v63 = vmul.f32 %v4572_v56, %v4572_v56 }
 0x180   : > { %1284 = vadd.xlane.f32.xlu1 %v1283_v1  ;;  %1218 = vadd.xlane.f32.xlu0 %v1217_v62  ;;  %v1105_v0 = vpop.f32.mrb[66].mxu0 }
 0x181   : > { %v4581_v2 = vmax.f32 %v1160_v61, 0.0  ;;  %v1137_v44 = vadd.f32 %v1105_v0, %v4453_v31  ;;  %v3470_v6 = vpop.f32.mrb[67].mxu0  ;;  %v1286_v9 = vsel %vm537_vm2, %v1247_v63, 0.0  ;;  %v3598_v31 = vpack.c.bf16 %v1632_v10, %v1631_v8 }
 0x182   : > { %v1487_v6 = vlaneseq }
 0x183   : > { %v1161_v21 = vadd.f32 %v4467_v5, %v1137_v44  ;;  %v1220_v12 = vsel %vm537_vm2, %v4581_v2, 0.0  ;;  %v1248_v46 = vmul.f32 %v4581_v2, %v4581_v2  ;;  %3599 = vmatprep.subr.bf16.mxu1 %v3598_v31 }
 0x184   : > { %1287 = vadd.xlane.f32.xlu0 %v1286_v9  ;;  %1221 = vadd.xlane.f32.xlu1 %v1220_v12  ;;  %v1110_v50 = vpop.f32.mrb[68].mxu0  ;;  %v4646_v12 = vstv %s3122_s18 }
 0x185   : > { %v4596_v18 = vmax.f32 %v1161_v21, 0.0  ;;  %v1138_v13 = vadd.f32 %v1110_v50, %v4455_v47  ;;  %v3473_v19 = vpop.f32.mrb[69].mxu0  ;;  %3601 = vmatpush3.bf16.msra.mxu1 %v3598_v31  ;;  %v1289_v24 = vsel %vm537_vm2, %v1248_v46, 0.0  ;;  %v4649_v50 = vshrl.u32 %v1487_v6, 7 }
 0x186   : > { %3603 = vmatprep.subr.bf16.mxu1 %v4635_v60 }
 0x187   : > { %v1162_v23 = vadd.f32 %v4467_v5, %v1138_v13  ;;  %v1223_v25 = vsel %vm537_vm2, %v4596_v18, 0.0  ;;  %v1249_v28 = vmul.f32 %v4596_v18, %v4596_v18 }
 0x188   : > { %1290 = vadd.xlane.f32.xlu1 %v1289_v24  ;;  %1224 = vadd.xlane.f32.xlu0 %v1223_v25  ;;  %v1115_v29 = vpop.f32.mrb[70].mxu0  ;;  %v1489_v25 = vadd.s32 8, %v4649_v50 }
 0x189   : > { %v4605_v22 = vmax.f32 %v1162_v23, 0.0  ;;  %v1139_v47 = vadd.f32 %v1115_v29, %v4457_v51  ;;  %v3476_v30 = vpop.f32.mrb[71].mxu0  ;;  %v1292_v35 = vsel %vm537_vm2, %v1249_v28, 0.0  ;;  %v1490_v29 = vadd.s32 16, %v4649_v50 }
 0x18b   : > { %v1163_v34 = vadd.f32 %v4467_v5, %v1139_v47  ;;  %v1226_v36 = vsel %vm537_vm2, %v4605_v22, 0.0  ;;  %v1250_v39 = vmul.f32 %v4605_v22, %v4605_v22 }
 0x18c   : > { %1293 = vadd.xlane.f32.xlu0 %v1292_v35  ;;  %1227 = vadd.xlane.f32.xlu1 %v1226_v36  ;;  %v1120_v40 = vpop.f32.mrb[72].mxu0 }
 0x18d   : > { %v4614_v27 = vmax.f32 %v1163_v34, 0.0  ;;  %v1140_v42 = vadd.f32 %v1120_v40, %v4459_v53  ;;  %v3479_v4 = vpop.f32.mrb[73].mxu0  ;;  %v1295_v15 = vsel %vm537_vm2, %v1250_v39, 0.0  ;;  %v1506_v34 = vadd.s32 %v4646_v12, %v4649_v50 }
 0x18e   : > { %v1507_v4 = vadd.s32 %v4646_v12, %v1489_v25 }
 0x18f   : > { %v1164_v51 = vadd.f32 %v4467_v5, %v1140_v42  ;;  %v1229_v55 = vsel %vm537_vm2, %v4614_v27, 0.0  ;;  %v1251_v17 = vmul.f32 %v4614_v27, %v4614_v27  ;;  %vm1523_vm5 = vcmp.ge.s32.totalorder %v1506_v34, 0 }
 0x190   : > { %1296 = vadd.xlane.f32.xlu1 %v1295_v15  ;;  %1230 = vadd.xlane.f32.xlu0 %v1229_v55  ;;  %vm1540_vm6 = vcmp.lt.s32.totalorder %v1506_v34, 200  ;;  %vm1524_vm7 = vcmp.ge.s32.totalorder %v1507_v4, 0  ;;  %vm1541_vm8 = vcmp.lt.s32.totalorder %v1507_v4, 200 }
 0x191   : > { %v4623_v41 = vmax.f32 %v1164_v51, 0.0  ;;  %v1298_v33 = vsel %vm537_vm2, %v1251_v17, 0.0  ;;  %v1491_v51 = vadd.s32 24, %v4649_v50  ;;  %v4667_v17 = vadd.s32 %v4646_v12, %v1490_v29  ;;  %vm4711_vm13 = vmand %vm1523_vm5, %vm1540_vm6 }
 0x192   : > { %vm4727_vm14 = vmand %vm1524_vm7, %vm1541_vm8 }
 0x193   : > { %v1233_v53 = vsel %vm1232_vm4, %v4623_v41, 0.0  ;;  %v1252_v5 = vmul.f32 %v4623_v41, %v4623_v41  ;;  %vm1525_vm9 = vcmp.ge.s32.totalorder %v4667_v17, 0  ;;  %vm1542_vm10 = vcmp.lt.s32.totalorder %v4667_v17, 200 }
 0x194   : > { %1299 = vadd.xlane.f32.xlu0 %v1298_v33  ;;  %1234 = vadd.xlane.f32.xlu1 %v1233_v53  ;;  %v4672_v53 = vld [vmem:[%s5605_s4] ss:$0 sm:$0xff] }
 0x195   : > { %v1301_v45 = vsel %vm1232_vm4, %v1252_v5, 0.0  ;;  %vm4762_vm4 = vmand %vm1525_vm9, %vm1542_vm10 }
 0x198   : > { %1302 = vadd.xlane.f32.xlu1 %v1301_v45 }
 0x1e1   : > { %v1186_v7 = vpop.xlane.xlu0 %1185 }
 0x1e2   : > { %v1304_v38 = vmul.f32 0.03125, %v1186_v7 }
 0x1e3   : > { %v1255_v54 = vpop.xlane.xlu1 %1254 }
 0x1e4   : > { %v1338_v57 = vmul.f32 %v1304_v38, %v1304_v38  ;;  %v1321_v59 = vmul.f32 0.03125, %v1255_v54  ;;  %v1406_v42 = vsub.f32 %v4470_v11, %v1304_v38  ;;  %v4679_v38 = vadd.s32 %v4646_v12, %v1491_v51 }
 0x1e5   : > { %v1189_v61 = vpop.xlane.xlu0 %1188  ;;  %v1492_v54 = vadd.s32 32, %v4649_v50 }
 0x1e6   : > { %v1355_v1 = vsub.f32 %v1321_v59, %v1338_v57  ;;  %v4638_v62 = vmul.f32 0.03125, %v1189_v61  ;;  %vm1526_vm11 = vcmp.ge.s32.totalorder %v4679_v38, 0  ;;  %vm1543_vm12 = vcmp.lt.s32.totalorder %v4679_v38, 200 }
 0x1e7   : > { %vm4808_vm7 = vmand %vm1526_vm11, %vm1543_vm12 }
 0x1e8   : > { %v1372_v63 = vadd.f32 1e-05, %v1355_v1  ;;  %v1339_v9 = vmul.f32 %v4638_v62, %v4638_v62  ;;  %v1407_v61 = vsub.f32 %v4477_v20, %v4638_v62 }
 0x1e9   : > { %v1258_v0 = vpop.xlane.xlu0 %1257  ;;  %v1192_v44 = vpop.xlane.xlu1 %1191 }
 0x1ea   : > { %3734 = vrsqrt.f32 %v1372_v63  ;;  %v1322_v8 = vmul.f32 0.03125, %v1258_v0  ;;  %v4644_v10 = vmul.f32 0.03125, %v1192_v44  ;;  %v4689_v0 = vld [vmem:[%s5606_s5] ss:$0 sm:$0xff]  ;;  %v1493_v44 = vadd.s32 40, %v4649_v50 }
 0x1ec   : > { %v1356_v21 = vsub.f32 %v1322_v8, %v1339_v9  ;;  %v1340_v19 = vmul.f32 %v4644_v10, %v4644_v10  ;;  %v1494_v9 = vadd.s32 48, %v4649_v50  ;;  %v1408_v29 = vsub.f32 %v4485_v32, %v4644_v10 }
 0x1ed   : > { %v1261_v46 = vpop.xlane.xlu1 %1260  ;;  %v1195_v31 = vpop.xlane.xlu0 %1194 }
 0x1ee   : > { %v1373_v13 = vadd.f32 1e-05, %v1356_v21  ;;  %v1323_v23 = vmul.f32 0.03125, %v1261_v46  ;;  %v4653_v24 = vmul.f32 0.03125, %v1195_v31 }
 0x1f0   : > { %3736 = vrsqrt.f32 %v1373_v13  ;;  %v1357_v28 = vsub.f32 %v1323_v23, %v1340_v19  ;;  %v1341_v36 = vmul.f32 %v4653_v24, %v4653_v24  ;;  %v4700_v13 = vadd.s32 %v4646_v12, %v1492_v54 }
 0x1f1   : > { %v1264_v47 = vpop.xlane.xlu0 %1263  ;;  %v1198_v30 = vpop.xlane.xlu1 %1197  ;;  %v1495_v19 = vadd.s32 56, %v4649_v50  ;;  %v1496_v23 = vadd.s32 64, %v4649_v50 }
 0x1f2   : > { %v1374_v35 = vadd.f32 1e-05, %v1357_v28  ;;  %v1324_v39 = vmul.f32 0.03125, %v1264_v47  ;;  %v4661_v40 = vmul.f32 0.03125, %v1198_v30  ;;  %vm1527_vm15 = vcmp.ge.s32.totalorder %v4700_v13, 0 }
 0x1f3   : > { %vm1544_vm0 = vcmp.lt.s32.totalorder %v4700_v13, 200 }
 0x1f4   : > { %v3735_v15 = vpop.eup %3734  ;;  %3738 = vrsqrt.f32 %v1374_v35  ;;  %v1358_v55 = vsub.f32 %v1324_v39, %v1341_v36  ;;  %v1342_v49 = vmul.f32 %v4661_v40, %v4661_v40  ;;  %v4716_v39 = vadd.s32 %v4646_v12, %v1493_v44  ;;  %vm4848_vm10 = vmand %vm1527_vm15, %vm1544_vm0 }
 0x1f5   : > { %v1423_v33 = vmul.f32 %v3735_v15, %v1406_v42  ;;  %v1267_v5 = vpop.xlane.xlu1 %1266  ;;  %v1201_v45 = vpop.xlane.xlu0 %1200  ;;  %v4719_v42 = vadd.s32 %v4646_v12, %v1494_v9  ;;  %v1410_v17 = vsub.f32 %v4503_v48, %v4661_v40 }
 0x1f6   : > { %v1375_v11 = vadd.f32 1e-05, %v1358_v55  ;;  %v1325_v52 = vmul.f32 0.03125, %v1267_v5  ;;  %v4676_v7 = vmul.f32 0.03125, %v1201_v45  ;;  %v4735_v45 = vadd.s32 %v4646_v12, %v1495_v19 }
 0x1f7   : > { %v1446_v59 = vmul.f32 %v4672_v53, %v1423_v33  ;;  %vm1528_vm5 = vcmp.ge.s32.totalorder %v4716_v39, 0  ;;  %vm1545_vm6 = vcmp.lt.s32.totalorder %v4716_v39, 200  ;;  %v1498_v19 = vadd.s32 80, %v4649_v50 }
 0x1f8   : > { %3740 = vrsqrt.f32 %v1375_v11  ;;  %v1359_v57 = vsub.f32 %v1325_v52, %v1342_v49  ;;  %v1343_v46 = vmul.f32 %v4676_v7, %v4676_v7  ;;  %v4738_v11 = vadd.s32 %v4646_v12, %v1496_v23 }
 0x1f9   : > { %v1270_v1 = vpop.xlane.xlu0 %1269  ;;  %v1204_v63 = vpop.xlane.xlu1 %1203  ;;  %v1469_v28 = vadd.f32 %v4689_v0, %v1446_v59  ;;  %v1497_v52 = vadd.s32 72, %v4649_v50  ;;  %vm1529_vm8 = vcmp.ge.s32.totalorder %v4719_v42, 0  ;;  %vm1546_vm9 = vcmp.lt.s32.totalorder %v4719_v42, 200 }
 0x1fa   : > { %v3737_v8 = vpop.eup %3736  ;;  %v1376_v21 = vadd.f32 1e-05, %v1359_v57  ;;  %v1326_v31 = vmul.f32 0.03125, %v1270_v1  ;;  %v4696_v20 = vmul.f32 0.03125, %v1204_v63  ;;  %v1409_v57 = vsub.f32 %v4494_v43, %v4653_v24  ;;  %vm1563_vm0 = vmand %vm1529_vm8, %vm1546_vm9 }
 0x1fb   : > { %v1424_v62 = vmul.f32 %v3737_v8, %v1407_v61  ;;  %v4742_v49 = vsel %vm4711_vm13, %v1469_v28, 0.0  ;;  %v1627_v28 = vld [vmem:[%s5607_s6 + $0x10] sm:$0xff]  ;;  %vm1530_vm11 = vcmp.ge.s32.totalorder %v4735_v45, 0  ;;  %vm1547_vm12 = vcmp.lt.s32.totalorder %v4735_v45, 200  ;;  %vm4883_vm13 = vmand %vm1528_vm5, %vm1545_vm6 }
 0x1fc   : > { %3742 = vrsqrt.f32 %v1376_v21  ;;  %v1360_v25 = vsub.f32 %v1326_v31, %v1343_v46  ;;  %v1344_v32 = vmul.f32 %v4696_v20, %v4696_v20  ;;  %v1654_v31 = vrot.slane %v4742_v49, 1  ;;  %vm1564_vm6 = vmand %vm1530_vm11, %vm1547_vm12 }
 0x1fd   : > { %v1273_v47 = vpop.xlane.xlu1 %1272  ;;  %v1207_v30 = vpop.xlane.xlu0 %1206  ;;  %v1447_v35 = vmul.f32 %v4672_v53, %v1424_v62  ;;  %v1412_v13 = vsub.f32 %v4521_v3, %v4696_v20  ;;  %vm1548_vm15 = vcmp.lt.s32.totalorder %v4738_v11, 200 }
 0x1fe   : > { %v3739_v51 = vpop.eup %3738  ;;  %v1377_v15 = vadd.f32 1e-05, %v1360_v25  ;;  %v1327_v10 = vmul.f32 0.03125, %v1273_v47  ;;  %v4723_v55 = vmul.f32 0.03125, %v1207_v30  ;;  %v4778_v25 = vadd.s32 %v4646_v12, %v1497_v52 }
 0x1ff   : > { %v1425_v33 = vmul.f32 %v3739_v51, %v1408_v29  ;;  %v1470_v5 = vadd.f32 %v4689_v0, %v1447_v35  ;;  %v1628_v29 = vld [vmem:[%s5607_s6 + $0x18] sm:$0xff]  ;;  %v1633_v51 = vld [vmem:[%s5607_s6 + $0x40] sm:$0xff] }
 0x200   : > { %3744 = vrsqrt.f32 %v1377_v15  ;;  %v1361_v4 = vsub.f32 %v1327_v10, %v1344_v32  ;;  %v1345_v59 = vmul.f32 %v4723_v55, %v4723_v55  ;;  %v1634_v15 = vld [vmem:[%s5607_s6 + $0x48] sm:$0xff]  ;;  %v3606_v38 = vpack.c.bf16 %v1628_v29, %v1627_v28 }
 0x201   : > { %v1448_v54 = vmul.f32 %v4672_v53, %v1425_v33  ;;  %v1276_v61 = vpop.xlane.xlu0 %1275  ;;  %v1210_v1 = vpop.xlane.xlu1 %1209  ;;  %v4752_v63 = vsel %vm4727_vm14, %v1470_v5, 0.0  ;;  %vm1531_vm14 = vcmp.ge.s32.totalorder %v4738_v11, 0  ;;  %vm1549_vm5 = vcmp.lt.s32.totalorder %v4778_v25, 200 }
 0x202   : > { %v3741_v44 = vpop.eup %3740  ;;  %v1378_v9 = vadd.f32 1e-05, %v1361_v4  ;;  %v1328_v8 = vmul.f32 0.03125, %v1276_v61  ;;  %v4755_v21 = vmul.f32 0.03125, %v1210_v1  ;;  %v1655_v46 = vrot.slane %v4752_v63, 1  ;;  %vm1565_vm9 = vmand %vm1531_vm14, %vm1548_vm15 }
 0x203   : > { %v1426_v24 = vmul.f32 %v3741_v44, %v1409_v57  ;;  %v1471_v62 = vadd.f32 %v4689_v0, %v1448_v54  ;;  %v4821_v57 = vadd.s32 %v4646_v12, %v1498_v19  ;;  %v1411_v61 = vsub.f32 %v4512_v58, %v4676_v7 }
 0x204   : > { %3746 = vrsqrt.f32 %v1378_v9  ;;  %v1362_v23 = vsub.f32 %v1328_v8, %v1345_v59  ;;  %v1346_v47 = vmul.f32 %v4755_v21, %v4755_v21  ;;  %v1656_v30 = vsel %vm503_vm1, %v1654_v31, %v1655_v46  ;;  %v4824_v59 = vld [vmem:[%s4815_s13] ss:$0 sm:$0xff] }
 0x205   : > { %v1279_v35 = vpop.xlane.xlu1 %1278  ;;  %v1213_v48 = vpop.xlane.xlu0 %1212  ;;  %v4791_v40 = vsel %vm4762_vm4, %v1471_v62, 0.0  ;;  %v1449_v36 = vmul.f32 %v4672_v53, %v1426_v24  ;;  %3488 = vmatprep.mubr.msk.f32.mxu1 %vm537_vm2, %v1656_v30  ;;  %v4828_v44 = vpack.c.bf16 %v1634_v15, %v1633_v51  ;;  %2693 = vbcast.lane.b32.xlu1 %v4824_v59, 264  ;;  %vm1532_vm4 = vcmp.ge.s32.totalorder %v4778_v25, 0 }
 0x206   : > { %v3743_v32 = vpop.eup %3742  ;;  %v1379_v10 = vadd.f32 1e-05, %v1362_v23  ;;  %v1329_v34 = vmul.f32 0.03125, %v1279_v35  ;;  %v4801_v33 = vmul.f32 0.03125, %v1213_v48  ;;  %v1657_v5 = vrot.slane %v4791_v40, 1  ;;  %2689 = vbcast.lane.b32.xlu0 %v4824_v59, 256  ;;  %vm1566_vm12 = vmand %vm1532_vm4, %vm1549_vm5 }
 0x207   : > { %v1427_v52 = vmul.f32 %v3743_v32, %v1410_v17  ;;  %v1472_v54 = vadd.f32 %v4689_v0, %v1449_v36  ;;  %vm1550_vm8 = vcmp.lt.s32.totalorder %v4821_v57, 200 }
 0x208   : > { %3748 = vrsqrt.f32 %v1379_v10  ;;  %v1363_v1 = vsub.f32 %v1329_v34, %v1346_v47  ;;  %v1347_v9 = vmul.f32 %v4801_v33, %v4801_v33  ;;  %v1658_v8 = vsel %vm503_vm1, %v1655_v46, %v1657_v5 }
 0x209   : > { %v1282_v43 = vpop.xlane.xlu0 %1281  ;;  %v1216_v24 = vpop.xlane.xlu1 %1215  ;;  %v4837_v31 = vsel %vm4808_vm7, %v1472_v54, 0.0  ;;  %v1450_v58 = vmul.f32 %v4672_v53, %v1427_v52  ;;  %3489 = vmatmul.mubr.msk.f32.vlgmr.msra.gmra.mrb[28].mxu1 %vm537_vm2, %v1658_v8  ;;  %v2044_v47 = vrot.slane %v4791_v40, 2  ;;  %2697 = vbcast.lane.b32.xlu1 %v4824_v59, 272  ;;  %v1413_v8 = vsub.f32 %v4530_v14, %v4723_v55 }
 0x20a   : > { %v3745_v7 = vpop.eup %3744  ;;  %v1380_v62 = vadd.f32 1e-05, %v1363_v1  ;;  %v1330_v19 = vmul.f32 0.03125, %v1282_v43  ;;  %v4841_v17 = vmul.f32 0.03125, %v1216_v24  ;;  %v1659_v23 = vrot.slane %v4837_v31, 1  ;;  %3605 = vmatpush3.bf16.msra.mxu1 %v4635_v60  ;;  %2705 = vbcast.lane.b32.xlu0 %v4824_v59, 288 }
 0x20b   : > { %v1428_v28 = vmul.f32 %v3745_v7, %v1411_v61  ;;  %v1473_v29 = vadd.f32 %v4689_v0, %v1450_v58  ;;  %v2046_v30 = vrot.slane %v4837_v31, 2  ;;  %3607 = vmatprep.subr.bf16.mxu1 %v3606_v38  ;;  %v1499_v1 = vadd.s32 88, %v4649_v50 }
 0x20c   : > { %3750 = vrsqrt.f32 %v1380_v62  ;;  %v1364_v35 = vsub.f32 %v1330_v19, %v1347_v9  ;;  %v1348_v48 = vmul.f32 %v4841_v17, %v4841_v17  ;;  %v1660_v36 = vsel %vm503_vm1, %v1657_v5, %v1659_v23 }
 0x20d   : > { %v1285_v51 = vpop.xlane.xlu1 %1284  ;;  %v1219_v15 = vpop.xlane.xlu0 %1218  ;;  %v4866_v60 = vsel %vm4848_vm10, %v1473_v29, 0.0  ;;  %v1451_v32 = vmul.f32 %v4672_v53, %v1428_v28  ;;  %v4872_v3 = vsel %vm906_vm3, %v2044_v47, %v2046_v30  ;;  %3491 = vmatprep.mubr.msk.f32.mxu1 %vm537_vm2, %v1660_v36  ;;  %2701 = vbcast.lane.b32.xlu1 %v4824_v59, 280  ;;  %vm1533_vm7 = vcmp.ge.s32.totalorder %v4821_v57, 0 }
 0x20e   : > { %v3747_v20 = vpop.eup %3746  ;;  %v1381_v10 = vadd.f32 1e-05, %v1364_v35  ;;  %v1331_v34 = vmul.f32 0.03125, %v1285_v51  ;;  %v4876_v5 = vmul.f32 0.03125, %v1219_v15  ;;  %v1661_v4 = vrot.slane %v4866_v60, 1  ;;  %3609 = vmatpush3.bf16.msra.mxu1 %v3606_v38  ;;  %2713 = vbcast.lane.b32.xlu0 %v4824_v59, 304  ;;  %vm1567_vm14 = vmand %vm1533_vm7, %vm1550_vm8 }
 0x20f   : > { %v1429_v54 = vmul.f32 %v3747_v20, %v1412_v13  ;;  %v1474_v61 = vadd.f32 %v4689_v0, %v1451_v32  ;;  %v2048_v9 = vrot.slane %v4866_v60, 2  ;;  %3611 = vmatprep.subr.bf16.mxu1 %v4828_v44  ;;  %v4920_v13 = vadd.s32 %v4646_v12, %v1499_v1 }
 0x210   : > { %3752 = vrsqrt.f32 %v1381_v10  ;;  %v1365_v39 = vsub.f32 %v1331_v34, %v1348_v48  ;;  %v1349_v43 = vmul.f32 %v4876_v5, %v4876_v5  ;;  %v1662_v24 = vsel %vm503_vm1, %v1659_v23, %v1661_v4 }
 0x211   : > { %v1288_v58 = vpop.xlane.xlu0 %1287  ;;  %v1222_v7 = vpop.xlane.xlu1 %1221  ;;  %v4901_v38 = vsel %vm4883_vm13, %v1474_v61, 0.0  ;;  %v1452_v62 = vmul.f32 %v4672_v53, %v1429_v54  ;;  %v4905_v14 = vsel %vm906_vm3, %v2046_v30, %v2048_v9  ;;  %3492 = vmatmul.mubr.msk.f32.gmra.mrb[30].mxu1 %vm537_vm2, %v1662_v24  ;;  %v1414_v48 = vsub.f32 %v4539_v26, %v4755_v21  ;;  %2709 = vbcast.lane.b32.xlu1 %v4824_v59, 296 }
 0x212   : > { %v3749_v55 = vpop.eup %3748  ;;  %v1382_v19 = vadd.f32 1e-05, %v1365_v39  ;;  %v1332_v46 = vmul.f32 0.03125, %v1288_v58  ;;  %v4909_v28 = vmul.f32 0.03125, %v1222_v7  ;;  %v1663_v23 = vrot.slane %v4901_v38, 1  ;;  %2721 = vbcast.lane.b32.xlu0 %v4824_v59, 320 }
 0x213   : > { %v1430_v29 = vmul.f32 %v3749_v55, %v1413_v8  ;;  %v1475_v30 = vadd.f32 %v4689_v0, %v1452_v62  ;;  %v2050_v35 = vrot.slane %v4901_v38, 2  ;;  %v1415_v39 = vsub.f32 %v4548_v37, %v4801_v33 }
 0x214   : > { %3754 = vrsqrt.f32 %v1382_v19  ;;  %v1366_v36 = vsub.f32 %v1332_v46, %v1349_v43  ;;  %v1350_v42 = vmul.f32 %v4909_v28, %v4909_v28  ;;  %v1664_v51 = vsel %vm503_vm1, %v1661_v4, %v1663_v23 }
 0x215   : > { %v1291_v15 = vpop.xlane.xlu1 %1290  ;;  %v1225_v32 = vpop.xlane.xlu0 %1224  ;;  %v4929_v20 = vsel %vm1563_vm0, %v1475_v30, 0.0  ;;  %v1453_v10 = vmul.f32 %v4672_v53, %v1430_v29  ;;  %v4933_v34 = vsel %vm906_vm3, %v2048_v9, %v2050_v35  ;;  %3494 = vmatprep.mubr.msk.f32.mxu1 %vm537_vm2, %v1664_v51  ;;  %v1500_v9 = vadd.s32 96, %v4649_v50  ;;  %2717 = vbcast.lane.b32.xlu1 %v4824_v59, 312 }
 0x216   : > { %v3751_v26 = vpop.eup %3750  ;;  %v1383_v21 = vadd.f32 1e-05, %v1366_v36  ;;  %v1333_v52 = vmul.f32 0.03125, %v1291_v15  ;;  %v4937_v54 = vmul.f32 0.03125, %v1225_v32  ;;  %v1665_v4 = vrot.slane %v4929_v20, 1 }
 0x217   : > { %v1431_v61 = vmul.f32 %v3751_v26, %v1414_v48  ;;  %v1476_v1 = vadd.f32 %v4689_v0, %v1453_v10  ;;  %v2052_v8 = vrot.slane %v4929_v20, 2  ;;  %vm1534_vm10 = vcmp.ge.s32.totalorder %v4920_v13, 0 }
 0x218   : > { %3756 = vrsqrt.f32 %v1383_v21  ;;  %v1367_v43 = vsub.f32 %v1333_v52, %v1350_v42  ;;  %v1351_v45 = vmul.f32 %v4937_v54, %v4937_v54  ;;  %v1666_v24 = vsel %vm503_vm1, %v1663_v23, %v1665_v4 }
 0x219   : > { %v1294_v58 = vpop.xlane.xlu0 %1293  ;;  %v1228_v7 = vpop.xlane.xlu1 %1227  ;;  %v4955_v62 = vsel %vm1564_vm6, %v1476_v1, 0.0  ;;  %v1454_v55 = vmul.f32 %v4672_v53, %v1431_v61  ;;  %v4959_v19 = vsel %vm906_vm3, %v2050_v35, %v2052_v8  ;;  %3495 = vmatmul.mubr.msk.f32.gmra.mrb[32].mxu1 %vm537_vm2, %v1666_v24  ;;  %vm1551_vm11 = vcmp.lt.s32.totalorder %v4920_v13, 200  ;;  %2725 = vbcast.lane.b32.xlu1 %v4824_v59, 328 }
 0x21a   : > { %v3753_v46 = vpop.eup %3752  ;;  %v1384_v37 = vadd.f32 1e-05, %v1367_v43  ;;  %v1334_v33 = vmul.f32 0.03125, %v1294_v58  ;;  %v4962_v29 = vmul.f32 0.03125, %v1228_v7  ;;  %v1667_v30 = vrot.slane %v4955_v62, 1  ;;  %vm1568_vm15 = vmand %vm1534_vm10, %vm1551_vm11 }
 0x21b   : > { %v1432_v23 = vmul.f32 %v3753_v46, %v1415_v39  ;;  %v1477_v48 = vadd.f32 %v4689_v0, %v1454_v55  ;;  %v4973_v35 = vadd.s32 %v4646_v12, %v1500_v9  ;;  %v2054_v36 = vrot.slane %v4955_v62, 2 }
 0x21c   : > { %v1416_v42 = vsub.f32 %v4557_v16, %v4841_v17  ;;  %3758 = vrsqrt.f32 %v1384_v37  ;;  %v1368_v51 = vsub.f32 %v1334_v33, %v1351_v45  ;;  %v1352_v11 = vmul.f32 %v4962_v29, %v4962_v29 }
 0x21d   : > { %v1668_v15 = vsel %vm503_vm1, %v1665_v4, %v1667_v30  ;;  %v1297_v32 = vpop.xlane.xlu1 %1296  ;;  %v1231_v10 = vpop.xlane.xlu0 %1230  ;;  %v4982_v26 = vsel %vm1565_vm9, %v1477_v48, 0.0  ;;  %v1455_v21 = vmul.f32 %v4672_v53, %v1432_v23  ;;  %v4986_v52 = vsel %vm906_vm3, %v2052_v8, %v2054_v36 }
 0x21e   : > { %v3755_v61 = vpop.eup %3754  ;;  %v1385_v16 = vadd.f32 1e-05, %v1368_v51  ;;  %3497 = vmatprep.mubr.msk.f32.mxu1 %vm537_vm2, %v1668_v15  ;;  %v1335_v17 = vmul.f32 0.03125, %v1297_v32  ;;  %v4989_v1 = vmul.f32 0.03125, %v1231_v10  ;;  %v1669_v9 = vrot.slane %v4982_v26, 1 }
 0x21f   : > { %v1433_v4 = vmul.f32 %v3755_v61, %v1416_v42  ;;  %v1478_v39 = vadd.f32 %v4689_v0, %v1455_v21  ;;  %vm1535_vm13 = vcmp.ge.s32.totalorder %v4973_v35, 0  ;;  %v1501_v8 = vadd.s32 104, %v4649_v50 }
 0x220   : > { %v2056_v43 = vrot.slane %v4982_v26, 2  ;;  %v1417_v45 = vsub.f32 %v4572_v56, %v4876_v5  ;;  %3760 = vrsqrt.f32 %v1385_v16  ;;  %v1369_v24 = vsub.f32 %v1335_v17, %v1352_v11 }
 0x221   : > { %v1353_v58 = vmul.f32 %v4989_v1, %v4989_v1  ;;  %v1670_v25 = vsel %vm503_vm1, %v1667_v30, %v1669_v9  ;;  %v1300_v7 = vpop.xlane.xlu0 %1299  ;;  %v1235_v55 = vpop.xlane.xlu1 %1234  ;;  %v5005_v46 = vsel %vm1566_vm12, %v1478_v39, 0.0  ;;  %v1456_v37 = vmul.f32 %v4672_v53, %v1433_v4 }
 0x222   : > { %v5009_v33 = vsel %vm906_vm3, %v2054_v36, %v2056_v43  ;;  %v3757_v23 = vpop.eup %3756  ;;  %v1386_v48 = vadd.f32 1e-05, %v1369_v24  ;;  %3498 = vmatmul.mubr.msk.f32.gmra.mrb[34].mxu1 %vm537_vm2, %v1670_v25  ;;  %v1336_v56 = vmul.f32 0.03125, %v1300_v7  ;;  %v5012_v5 = vmul.f32 0.03125, %v1235_v55 }
 0x223   : > { %v1671_v42 = vrot.slane %v5005_v46, 1  ;;  %v1434_v30 = vmul.f32 %v3757_v23, %v1417_v45  ;;  %v1479_v51 = vadd.f32 %v4689_v0, %v1456_v37  ;;  %v1502_v36 = vadd.s32 112, %v4649_v50 }
 0x224   : > { %v2058_v11 = vrot.slane %v5005_v46, 2  ;;  %v1418_v15 = vsub.f32 %v4581_v2, %v4909_v28  ;;  %3762 = vrsqrt.f32 %v1386_v48  ;;  %v1370_v32 = vsub.f32 %v1336_v56, %v1353_v58 }
 0x225   : > { %v1354_v10 = vmul.f32 %v5012_v5, %v5012_v5  ;;  %v1672_v21 = vsel %vm503_vm1, %v1669_v9, %v1671_v42  ;;  %v1303_v61 = vpop.xlane.xlu1 %1302  ;;  %v5027_v57 = vsel %vm1567_vm14, %v1479_v51, 0.0  ;;  %v1457_v16 = vmul.f32 %v4672_v53, %v1434_v30 }
 0x226   : > { %v5031_v17 = vsel %vm906_vm3, %v2056_v43, %v2058_v11  ;;  %v3759_v4 = vpop.eup %3758  ;;  %v1387_v39 = vadd.f32 1e-05, %v1370_v32  ;;  %3500 = vmatprep.mubr.msk.f32.mxu1 %vm537_vm2, %v1672_v21  ;;  %v1337_v2 = vmul.f32 0.03125, %v1303_v61  ;;  %v1673_v28 = vrot.slane %v5027_v57, 1 }
 0x227   : > { %v2060_v9 = vrot.slane %v5027_v57, 2  ;;  %v1435_v45 = vmul.f32 %v3759_v4, %v1418_v15  ;;  %v1480_v24 = vadd.f32 %v4689_v0, %v1457_v16  ;;  %vm1552_vm0 = vcmp.lt.s32.totalorder %v4973_v35, 200 }
 0x228   : > { %v1519_v43 = vadd.s32 %v4646_v12, %v1501_v8  ;;  %3764 = vrsqrt.f32 %v1387_v39  ;;  %v1371_v58 = vsub.f32 %v1337_v2, %v1354_v10  ;;  %v1674_v25 = vsel %vm503_vm1, %v1671_v42, %v1673_v28  ;;  %vm1569_vm4 = vmand %vm1535_vm13, %vm1552_vm0 }
 0x229   : > { %v5045_v7 = vsel %vm906_vm3, %v2058_v11, %v2060_v9  ;;  %v1419_v13 = vsub.f32 %v4596_v18, %v4937_v54  ;;  %3501 = vmatmul.mubr.msk.f32.gmra.mrb[36].mxu1 %vm537_vm2, %v1674_v25  ;;  %v5050_v55 = vsel %vm1568_vm15, %v1480_v24, 0.0  ;;  %v1458_v37 = vmul.f32 %v4672_v53, %v1435_v45 }
 0x22a   : > { %v1520_v23 = vadd.s32 %v4646_v12, %v1502_v36  ;;  %v3761_v48 = vpop.eup %3760  ;;  %v1388_v8 = vadd.f32 1e-05, %v1371_v58  ;;  %v1675_v56 = vrot.slane %v5050_v55, 1  ;;  %v1503_v42 = vadd.s32 120, %v4649_v50 }
 0x22b   : > { %v2062_v30 = vrot.slane %v5050_v55, 2  ;;  %v1436_v18 = vmul.f32 %v3761_v48, %v1419_v13  ;;  %v1481_v54 = vadd.f32 %v4689_v0, %v1458_v37  ;;  %vm1536_vm5 = vcmp.ge.s32.totalorder %v1519_v43, 0 }
 0x22c   : > { %vm1553_vm6 = vcmp.lt.s32.totalorder %v1519_v43, 200  ;;  %3766 = vrsqrt.f32 %v1388_v8  ;;  %v1676_v51 = vsel %vm503_vm1, %v1673_v28, %v1675_v56  ;;  %v1420_v11 = vsub.f32 %v4605_v22, %v4962_v29 }
 0x22d   : > { %v5062_v36 = vsel %vm906_vm3, %v2060_v9, %v2062_v30  ;;  %3503 = vmatprep.mubr.msk.f32.mxu1 %vm537_vm2, %v1676_v51  ;;  %v5067_v35 = vsel %vm1569_vm4, %v1481_v54, 0.0  ;;  %v1459_v15 = vmul.f32 %v4672_v53, %v1436_v18  ;;  %vm1570_vm7 = vmand %vm1536_vm5, %vm1553_vm6  ;;  %vm1537_vm8 = vcmp.ge.s32.totalorder %v1520_v23, 0 }
 0x22e   : > { %v3763_v32 = vpop.eup %3762  ;;  %v1677_v10 = vrot.slane %v5067_v35, 1  ;;  %v1521_v21 = vadd.s32 %v4646_v12, %v1503_v42  ;;  %v2064_v61 = vrot.slane %v5067_v35, 2  ;;  %vm1554_vm9 = vcmp.lt.s32.totalorder %v1520_v23, 200 }
 0x22f   : > { %v1437_v16 = vmul.f32 %v3763_v32, %v1420_v11  ;;  %v1482_v4 = vadd.f32 %v4689_v0, %v1459_v15  ;;  %v1504_v22 = vadd.s32 128, %v4649_v50  ;;  %v1421_v2 = vsub.f32 %v4614_v27, %v4989_v1  ;;  %vm1571_vm10 = vmand %vm1537_vm8, %vm1554_vm9 }
 0x230   : > { %v1678_v29 = vsel %vm503_vm1, %v1675_v56, %v1677_v10  ;;  %v5077_v39 = vsel %vm906_vm3, %v2062_v30, %v2064_v61  ;;  %vm1538_vm11 = vcmp.ge.s32.totalorder %v1521_v21, 0  ;;  %vm1555_vm12 = vcmp.lt.s32.totalorder %v1521_v21, 200 }
 0x231   : > { %3504 = vmatmul.mubr.msk.f32.gmra.mrb[38].mxu1 %vm537_vm2, %v1678_v29  ;;  %v1621_v28 = vsel %vm1570_vm7, %v1482_v4, 0.0  ;;  %v1460_v9 = vmul.f32 %v4672_v53, %v1437_v16  ;;  %v1522_v13 = vadd.s32 %v4646_v12, %v1504_v22  ;;  %v1422_v1 = vsub.f32 %v4623_v41, %v5012_v5  ;;  %vm1572_vm13 = vmand %vm1538_vm11, %vm1555_vm12  ;;  %v1636_v22 = vld [vmem:[%s5607_s6 + $0x58] sm:$0xff] }
 0x232   : > { %v3765_v45 = vpop.eup %3764  ;;  %v1679_v24 = vrot.slane %v1621_v28, 1  ;;  %v2066_v43 = vrot.slane %v1621_v28, 2  ;;  %vm2879_vm4 = vcmask 326912   ;;  %vm2886_vm5 = vcmask 392512  }
 0x233   : > { %v1438_v58 = vmul.f32 %v3765_v45, %v1421_v2  ;;  %v1483_v25 = vadd.f32 %v4689_v0, %v1460_v9  ;;  %vm1539_vm14 = vcmp.ge.s32.totalorder %v1522_v13, 0  ;;  %vm1556_vm15 = vcmp.lt.s32.totalorder %v1522_v13, 200 }
 0x234   : > { %v1680_v37 = vsel %vm503_vm1, %v1677_v10, %v1679_v24  ;;  %v5088_v27 = vsel %vm906_vm3, %v2064_v61, %v2066_v43  ;;  %vm1573_vm0 = vmand %vm1539_vm14, %vm1556_vm15  ;;  %vm2893_vm6 = vcmask 458112   ;;  %vm2900_vm7 = vcmask 523712  }
 0x235   : > { %3506 = vmatprep.mubr.msk.f32.mxu1 %vm537_vm2, %v1680_v37  ;;  %v1622_v23 = vsel %vm1571_vm10, %v1483_v25, 0.0  ;;  %v1461_v48 = vmul.f32 %v4672_v53, %v1438_v58  ;;  %vm2907_vm8 = vcmask 589312   ;;  %vm2914_vm9 = vcmask 654912  }
 0x236   : > { %v3767_v8 = vpop.eup %3766  ;;  %v1681_v56 = vrot.slane %v1622_v23, 1  ;;  %v2068_v42 = vrot.slane %v1622_v23, 2  ;;  %vm2921_vm10 = vcmask 720512   ;;  %vm2928_vm11 = vcmask 786112  }
 0x237   : > { %v1439_v30 = vmul.f32 %v3767_v8, %v1422_v1  ;;  %v1484_v12 = vadd.f32 %v4689_v0, %v1461_v48  ;;  %vm2935_vm12 = vcmask 851712   ;;  %vm2949_vm14 = vcmask 982912  }
 0x238   : > { %v1682_v18 = vsel %vm503_vm1, %v1679_v24, %v1681_v56  ;;  %v2069_v54 = vsel %vm906_vm3, %v2066_v43, %v2068_v42  ;;  %vm2956_vm15 = vcmask 1048512  }
 0x239   : > { %3507 = vmatmul.mubr.msk.f32.gmra.mrb[40].mxu1 %vm537_vm2, %v1682_v18  ;;  %v1623_v41 = vsel %vm1572_vm13, %v1484_v12, 0.0  ;;  %v1462_v5 = vmul.f32 %v4672_v53, %v1439_v30  ;;  %v1635_v53 = vld [vmem:[%s5607_s6 + $0x50] sm:$0xff]  ;;  %vm2942_vm13 = vcmask 917312  }
 0x23a   : > { %v1683_v51 = vrot.slane %v1623_v41, 1  ;;  %v2070_v11 = vrot.slane %v1623_v41, 2  ;;  %v3614_v29 = vpack.c.bf16 %v1636_v22, %v1635_v53 }
 0x23b   : > { %v1485_v15 = vadd.f32 %v4689_v0, %v1462_v5 }
 0x23c   : > { %v1684_v32 = vsel %vm503_vm1, %v1681_v56, %v1683_v51  ;;  %v2071_v10 = vsel %vm906_vm3, %v2068_v42, %v2070_v11 }
 0x23d   : > { %3509 = vmatprep.mubr.msk.f32.mxu1 %vm537_vm2, %v1684_v32  ;;  %v1624_v21 = vsel %vm1573_vm0, %v1485_v15, 0.0 }
 0x23e   : > { %v1685_v61 = vrot.slane %v1624_v21, 1  ;;  %v2072_v16 = vrot.slane %v1624_v21, 2 }
 0x240   : > { %v1686_v4 = vsel %vm503_vm1, %v1683_v51, %v1685_v61  ;;  %v2073_v0 = vsel %vm906_vm3, %v2070_v11, %v2072_v16  ;;  %vm2858_vm1 = vcmask 130112  }
 0x241   : > { %3510 = vmatmul.mubr.msk.f32.gmra.mrb[42].mxu1 %vm537_vm2, %v1686_v4 }
 0x242   : > { %3520 = vmatprep.mubr.msk.f32.mxu1 %vm537_vm2, %v4742_v49 }
 0x245   : > { %3521 = vmatmul.mubr.msk.f32.vlgmr.msra.gmra.mrb[28].mxu1 %vm537_vm2, %v4752_v63 }
 0x246   : > { %3613 = vmatpush3.bf16.msra.mxu1 %v4828_v44  ;;  %3523 = vmatprep.mubr.msk.f32.mxu1 %vm537_vm2, %v4791_v40  ;;  %v2042_v44 = vrot.slane %v4752_v63, 2 }
 0x247   : > { %3615 = vmatprep.subr.bf16.mxu1 %v3614_v29 }
 0x249   : > { %3524 = vmatmul.mubr.msk.f32.gmra.mrb[30].mxu1 %vm537_vm2, %v4837_v31  ;;  %v2041_v31 = vrot.slane %v4742_v49, 2  ;;  %v5178_v49 = vld [vmem:[%s5608_s7] ss:$0 sm:$0xff] }
 0x24a   : > { %3526 = vmatprep.mubr.msk.f32.mxu1 %vm537_vm2, %v4866_v60  ;;  %3617 = vmatpush3.bf16.msra.mxu1 %v3614_v29 }
 0x24b   : > { %v2043_v60 = vsel %vm906_vm3, %v2041_v31, %v2042_v44 }
 0x24d   : > { %3527 = vmatmul.mubr.msk.f32.gmra.mrb[32].mxu1 %vm537_vm2, %v4901_v38  ;;  %v2045_v38 = vsel %vm906_vm3, %v2042_v44, %v2044_v47  ;;  %vm2872_vm3 = vcmask 261312  }
 0x24e   : > { %3529 = vmatprep.mubr.msk.f32.mxu1 %vm537_vm2, %v4929_v20 }
 0x251   : > { %3530 = vmatmul.mubr.msk.f32.gmra.mrb[34].mxu1 %vm537_vm2, %v4955_v62 }
 0x252   : > { %3532 = vmatprep.mubr.msk.f32.mxu1 %vm537_vm2, %v4982_v26 }
 0x255   : > { %3533 = vmatmul.mubr.msk.f32.gmra.mrb[36].mxu1 %vm537_vm2, %v5005_v46 }
 0x256   : > { %3535 = vmatprep.mubr.msk.f32.mxu1 %vm537_vm2, %v5027_v57 }
 0x259   : > { %3536 = vmatmul.mubr.msk.f32.gmra.mrb[38].mxu1 %vm537_vm2, %v5050_v55 }
 0x25a   : > { %3538 = vmatprep.mubr.msk.f32.mxu1 %vm537_vm2, %v5067_v35 }
 0x25d   : > { %3539 = vmatmul.mubr.msk.f32.gmra.mrb[40].mxu1 %vm537_vm2, %v1621_v28 }
 0x25e   : > { %3541 = vmatprep.mubr.msk.f32.mxu1 %vm537_vm2, %v1622_v23 }
 0x261   : > { %3542 = vmatmul.mubr.msk.f32.gmra.mrb[42].mxu1 %vm537_vm2, %v1623_v41 }
 0x262   : > { %3552 = vmatprep.mubr.msk.f32.mxu1 %vm537_vm2, %v2043_v60 }
 0x265   : > { %3553 = vmatmul.mubr.msk.f32.vlgmr.msra.gmra.mrb[28].mxu1 %vm537_vm2, %v2045_v38 }
 0x266   : > { %3555 = vmatprep.mubr.msk.f32.mxu1 %vm537_vm2, %v4872_v3 }
 0x269   : > { %3556 = vmatmul.mubr.msk.f32.gmra.mrb[30].mxu1 %vm537_vm2, %v4905_v14 }
 0x26a   : > { %3558 = vmatprep.mubr.msk.f32.mxu1 %vm537_vm2, %v4933_v34 }
 0x26d   : > { %3559 = vmatmul.mubr.msk.f32.gmra.mrb[32].mxu1 %vm537_vm2, %v4959_v19 }
 0x26e   : > { %3561 = vmatprep.mubr.msk.f32.mxu1 %vm537_vm2, %v4986_v52 }
 0x271   : > { %3562 = vmatmul.mubr.msk.f32.gmra.mrb[34].mxu1 %vm537_vm2, %v5009_v33 }
 0x272   : > { %3564 = vmatprep.mubr.msk.f32.mxu1 %vm537_vm2, %v5031_v17 }
 0x275   : > { %3565 = vmatmul.mubr.msk.f32.gmra.mrb[36].mxu1 %vm537_vm2, %v5045_v7 }
 0x276   : > { %3567 = vmatprep.mubr.msk.f32.mxu1 %vm537_vm2, %v5062_v36 }
 0x279   : > { %3568 = vmatmul.mubr.msk.f32.gmra.mrb[38].mxu1 %vm537_vm2, %v5077_v39 }
 0x27a   : > { %3570 = vmatprep.mubr.msk.f32.mxu1 %vm537_vm2, %v5088_v27 }
 0x27d   : > { %3571 = vmatmul.mubr.msk.f32.gmra.mrb[40].mxu1 %vm537_vm2, %v2069_v54 }
 0x27e   : > { %3573 = vmatprep.mubr.msk.f32.mxu1 %vm537_vm2, %v2071_v10 }
 0x281   : > { %3574 = vmatmul.mubr.msk.f32.gmra.mrb[42].mxu1 %vm537_vm2, %v2073_v0 }
 0x338   : > { %v3554_v63 = vpop.f32.mrb[28].mxu1 }
 0x339   : > { %v2275_v40 = vadd.f32 %v3554_v63, %v5178_v49  ;;  %v2172_v47 = vpop.f32.mrb[29].mxu1 }
 0x33a   : > { %v2274_v3 = vadd.f32 %v5178_v49, %v2172_v47 }
 0x33b   : > { %v5182_v14 = vmax.f32 %v2275_v40, 0.0 }
 0x33c   : > { %v5184_v20 = vmax.f32 %v2274_v3, 0.0  ;;  %v3557_v34 = vpop.f32.mrb[30].mxu1 }
 0x33d   : > { %v2277_v62 = vadd.f32 %v3557_v34, %v5178_v49  ;;  %v2182_v19 = vpop.f32.mrb[31].mxu1  ;;  %v2311_v26 = vsel %vm537_vm2, %v5182_v14, 0.0  ;;  %v2357_v52 = vmul.f32 %v5182_v14, %v5182_v14 }
 0x33e   : > { %v2276_v46 = vadd.f32 %v5178_v49, %v2182_v19  ;;  %2312 = vadd.xlane.f32.xlu1 %v2311_v26  ;;  %v2308_v33 = vsel %vm537_vm2, %v5184_v20, 0.0  ;;  %v2356_v57 = vmul.f32 %v5184_v20, %v5184_v20 }
 0x33f   : > { %2309 = vadd.xlane.f32.xlu0 %v2308_v33  ;;  %v5196_v7 = vmax.f32 %v2277_v62, 0.0  ;;  %v2375_v36 = vsel %vm537_vm2, %v2357_v52, 0.0 }
 0x340   : > { %v3560_v17 = vpop.f32.mrb[32].mxu1  ;;  %v5199_v35 = vmax.f32 %v2276_v46, 0.0  ;;  %v2372_v2 = vsel %vm537_vm2, %v2356_v57, 0.0 }
 0x341   : > { %v2192_v55 = vpop.f32.mrb[33].mxu1  ;;  %v2279_v39 = vadd.f32 %v3560_v17, %v5178_v49  ;;  %v2317_v45 = vsel %vm537_vm2, %v5196_v7, 0.0  ;;  %v2359_v24 = vmul.f32 %v5196_v7, %v5196_v7 }
 0x342   : > { %2376 = vadd.xlane.f32.xlu1 %v2375_v36  ;;  %v2278_v58 = vadd.f32 %v5178_v49, %v2192_v55  ;;  %v2314_v25 = vsel %vm537_vm2, %v5199_v35, 0.0  ;;  %v2358_v1 = vmul.f32 %v5199_v35, %v5199_v35 }
 0x343   : > { %2373 = vadd.xlane.f32.xlu0 %v2372_v2  ;;  %v5207_v43 = vmax.f32 %v2279_v39, 0.0  ;;  %v2381_v27 = vsel %vm537_vm2, %v2359_v24, 0.0 }
 0x344   : > { %v3563_v28 = vpop.f32.mrb[34].mxu1  ;;  %v5215_v23 = vmax.f32 %v2278_v58, 0.0  ;;  %v2378_v30 = vsel %vm537_vm2, %v2358_v1, 0.0 }
 0x345   : > { %v2202_v9 = vpop.f32.mrb[35].mxu1  ;;  %v2281_v48 = vadd.f32 %v3563_v28, %v5178_v49  ;;  %v2323_v8 = vsel %vm537_vm2, %v5207_v43, 0.0  ;;  %v2361_v12 = vmul.f32 %v5207_v43, %v5207_v43 }
 0x346   : > { %2318 = vadd.xlane.f32.xlu1 %v2317_v45  ;;  %v2280_v54 = vadd.f32 %v5178_v49, %v2202_v9  ;;  %v2320_v41 = vsel %vm537_vm2, %v5215_v23, 0.0  ;;  %v2360_v15 = vmul.f32 %v5215_v23, %v5215_v23 }
 0x347   : > { %2315 = vadd.xlane.f32.xlu0 %v2314_v25  ;;  %v5223_v18 = vmax.f32 %v2281_v48, 0.0  ;;  %v2387_v11 = vsel %vm537_vm2, %v2361_v12, 0.0 }
 0x348   : > { %v3566_v13 = vpop.f32.mrb[36].mxu1  ;;  %v5231_v32 = vmax.f32 %v2280_v54, 0.0  ;;  %v2384_v4 = vsel %vm537_vm2, %v2360_v15, 0.0  ;;  %v5318_v15 = vpop.permute.xlu0 %2689 }
 0x349   : > { %v2212_v37 = vpop.f32.mrb[37].mxu1  ;;  %v2283_v10 = vadd.f32 %v3566_v13, %v5178_v49  ;;  %v2329_v21 = vsel %vm537_vm2, %v5223_v18, 0.0  ;;  %v2363_v53 = vmul.f32 %v5223_v18, %v5223_v18 }
 0x34a   : > { %2382 = vadd.xlane.f32.xlu1 %v2381_v27  ;;  %v2282_v0 = vadd.f32 %v5178_v49, %v2212_v37  ;;  %v2326_v29 = vsel %vm537_vm2, %v5231_v32, 0.0  ;;  %v2362_v31 = vmul.f32 %v5231_v32, %v5231_v32 }
 0x34b   : > { %2324 = vadd.xlane.f32.xlu0 %v2323_v8  ;;  %v5239_v22 = vmax.f32 %v2283_v10, 0.0  ;;  %v2393_v44 = vsel %vm537_vm2, %v2363_v53, 0.0  ;;  %v2663_v10 = vld [vmem:[#allocation2] sm:$0x1] }
 0x34c   : > { %v3569_v56 = vpop.f32.mrb[38].mxu1  ;;  %v5247_v60 = vmax.f32 %v2282_v0, 0.0  ;;  %v2390_v40 = vsel %vm537_vm2, %v2362_v31, 0.0  ;;  %3655 = vpush %v2663_v10 }
 0x34d   : > { %v2222_v42 = vpop.f32.mrb[39].mxu1  ;;  %v2285_v38 = vadd.f32 %v3569_v56, %v5178_v49  ;;  %v2335_v63 = vsel %vm537_vm2, %v5239_v22, 0.0  ;;  %v2365_v47 = vmul.f32 %v5239_v22, %v5239_v22 }
 0x34e   : > { %2379 = vadd.xlane.f32.xlu1 %v2378_v30  ;;  %v2284_v34 = vadd.f32 %v5178_v49, %v2222_v42  ;;  %v2332_v62 = vsel %vm537_vm2, %v5247_v60, 0.0  ;;  %v2364_v26 = vmul.f32 %v5247_v60, %v5247_v60 }
 0x34f   : > { %2321 = vadd.xlane.f32.xlu0 %v2320_v41  ;;  %v5255_v3 = vmax.f32 %v2285_v38, 0.0  ;;  %v2399_v19 = vsel %vm537_vm2, %v2365_v47, 0.0 }
 0x350   : > { %v3572_v5 = vpop.f32.mrb[40].mxu1  ;;  %v5263_v52 = vmax.f32 %v2284_v34, 0.0  ;;  %v2396_v57 = vsel %vm537_vm2, %v2364_v26, 0.0 }
 0x351   : > { %v2232_v51 = vpop.f32.mrb[41].mxu1  ;;  %v2287_v46 = vadd.f32 %v3572_v5, %v5178_v49  ;;  %v2341_v33 = vsel %vm537_vm2, %v5255_v3, 0.0  ;;  %v2367_v17 = vmul.f32 %v5255_v3, %v5255_v3  ;;  %v5312_v5 = vpop.permute.xlu1 %2693 }
 0x352   : > { %2388 = vadd.xlane.f32.xlu1 %v2387_v11  ;;  %v2286_v36 = vadd.f32 %v5178_v49, %v2232_v51  ;;  %v2338_v39 = vsel %vm537_vm2, %v5263_v52, 0.0  ;;  %v2366_v28 = vmul.f32 %v5263_v52, %v5263_v52 }
 0x353   : > { %2330 = vadd.xlane.f32.xlu0 %v2329_v21  ;;  %v5271_v55 = vmax.f32 %v2287_v46, 0.0  ;;  %v2405_v2 = vsel %vm537_vm2, %v2367_v17, 0.0 }
 0x354   : > { %v3575_v61 = vpop.f32.mrb[42].mxu1  ;;  %v5279_v9 = vmax.f32 %v2286_v36, 0.0  ;;  %v2402_v58 = vsel %vm537_vm2, %v2366_v28, 0.0 }
 0x355   : > { %v2242_v16 = vpop.f32.mrb[43].mxu1  ;;  %v2289_v45 = vadd.f32 %v3575_v61, %v5178_v49  ;;  %v2347_v24 = vsel %vm537_vm2, %v5271_v55, 0.0  ;;  %v2369_v25 = vmul.f32 %v5271_v55, %v5271_v55  ;;  %v5314_v51 = vpop.permute.xlu1 %2697 }
 0x356   : > { %2385 = vadd.xlane.f32.xlu1 %v2384_v4  ;;  %v2288_v37 = vadd.f32 %v5178_v49, %v2242_v16  ;;  %v2344_v27 = vsel %vm537_vm2, %v5279_v9, 0.0  ;;  %v2368_v48 = vmul.f32 %v5279_v9, %v5279_v9  ;;  %v5322_v61 = vpop.permute.xlu0 %2705 }
 0x357   : > { %2327 = vadd.xlane.f32.xlu0 %v2326_v29  ;;  %v5287_v13 = vmax.f32 %v2289_v45, 0.0  ;;  %v2411_v1 = vsel %vm537_vm2, %v2369_v25, 0.0 }
 0x358   : > { %v5295_v8 = vmax.f32 %v2288_v37, 0.0  ;;  %v2408_v42 = vsel %vm537_vm2, %v2368_v48, 0.0 }
 0x359   : > { %v2353_v56 = vsel %vm537_vm2, %v5287_v13, 0.0  ;;  %v2371_v49 = vmul.f32 %v5287_v13, %v5287_v13  ;;  %v5316_v11 = vpop.permute.xlu1 %2701 }
 0x35a   : > { %2394 = vadd.xlane.f32.xlu1 %v2393_v44  ;;  %v2350_v30 = vsel %vm537_vm2, %v5295_v8, 0.0  ;;  %v2370_v12 = vmul.f32 %v5295_v8, %v5295_v8  ;;  %v5326_v4 = vpop.permute.xlu0 %2713 }
 0x35b   : > { %2336 = vadd.xlane.f32.xlu0 %v2335_v63  ;;  %v2417_v54 = vsel %vm537_vm2, %v2371_v49, 0.0 }
 0x35c   : > { %v2414_v41 = vsel %vm537_vm2, %v2370_v12, 0.0 }
 0x35d   : > { %v5320_v21 = vpop.permute.xlu1 %2709 }
 0x35e   : > { %2391 = vadd.xlane.f32.xlu1 %v2390_v40 }
 0x35f   : > { %2333 = vadd.xlane.f32.xlu0 %v2332_v62 }
 0x361   : > { %v5324_v16 = vpop.permute.xlu1 %2717 }
 0x362   : > { %2400 = vadd.xlane.f32.xlu1 %v2399_v19 }
 0x363   : > { %2342 = vadd.xlane.f32.xlu0 %v2341_v33 }
 0x365   : > { %v5328_v53 = vpop.permute.xlu1 %2725 }
 0x366   : > { %2397 = vadd.xlane.f32.xlu1 %v2396_v57 }
 0x367   : > { %2339 = vadd.xlane.f32.xlu0 %v2338_v39 }
 0x36a   : > { %2406 = vadd.xlane.f32.xlu1 %v2405_v2 }
 0x36b   : > { %2348 = vadd.xlane.f32.xlu0 %v2347_v24 }
 0x36e   : > { %2403 = vadd.xlane.f32.xlu1 %v2402_v58 }
 0x36f   : > { %2345 = vadd.xlane.f32.xlu0 %v2344_v27 }
 0x372   : > { %2412 = vadd.xlane.f32.xlu1 %v2411_v1 }
 0x373   : > { %2354 = vadd.xlane.f32.xlu0 %v2353_v56 }
 0x376   : > { %2409 = vadd.xlane.f32.xlu1 %v2408_v42 }
 0x377   : > { %2351 = vadd.xlane.f32.xlu0 %v2350_v30 }
 0x37a   : > { %2418 = vadd.xlane.f32.xlu1 %v2417_v54 }
 0x37b   : > { %2415 = vadd.xlane.f32.xlu0 %v2414_v41 }
 0x37d   : > { %s3656_s20 = spop %3655 }
 0x38b   : > { %2733 = vbcast.lane.b32.xlu1 %v4824_v59, 344 }
 0x38f   : > { %2741 = vbcast.lane.b32.xlu1 %v4824_v59, 360 }
 0x391   : > { %2729 = vbcast.lane.b32.xlu0 %v4824_v59, 336 }
 0x395   : > { %2737 = vbcast.lane.b32.xlu0 %v4824_v59, 352  ;;  %v5330_v59 = vpop.permute.xlu0 %2721 }
 0x3cb   : > { %v2313_v0 = vpop.xlane.xlu1 %2312 }
 0x3cc   : > { %v2421_v29 = vmul.f32 0.03125, %v2313_v0  ;;  %v2310_v44 = vpop.xlane.xlu0 %2309 }
 0x3cd   : > { %v2420_v31 = vmul.f32 0.03125, %v2310_v44 }
 0x3ce   : > { %v2453_v63 = vmul.f32 %v2421_v29, %v2421_v29  ;;  %v2517_v49 = vsub.f32 %v5182_v14, %v2421_v29 }
 0x3cf   : > { %v2377_v38 = vpop.xlane.xlu1 %2376  ;;  %v2452_v34 = vmul.f32 %v2420_v31, %v2420_v31  ;;  %v2516_v30 = vsub.f32 %v5184_v20, %v2420_v31  ;;  %v5352_v20 = vld [vmem:[%s5610_s9] ss:$0 sm:$0xff] }
 0x3d0   : > { %v2437_v40 = vmul.f32 0.03125, %v2377_v38  ;;  %v2374_v47 = vpop.xlane.xlu0 %2373 }
 0x3d1   : > { %v2436_v62 = vmul.f32 0.03125, %v2374_v47 }
 0x3d2   : > { %v2469_v19 = vsub.f32 %v2437_v40, %v2453_v63  ;;  %v5347_v63 = vld [vmem:[%s5609_s8] ss:$0 sm:$0xff] }
 0x3d3   : > { %v2468_v26 = vsub.f32 %v2436_v62, %v2452_v34  ;;  %v2319_v46 = vpop.xlane.xlu1 %2318 }
 0x3d4   : > { %v2485_v33 = vadd.f32 1e-05, %v2469_v19  ;;  %v2423_v57 = vmul.f32 0.03125, %v2319_v46  ;;  %v2316_v17 = vpop.xlane.xlu0 %2315 }
 0x3d5   : > { %v2484_v36 = vadd.f32 1e-05, %v2468_v26  ;;  %v5332_v28 = vmul.f32 0.03125, %v2316_v17  ;;  %v5362_v17 = vld [vmem:[%s5611_s10] ss:$0 sm:$0xff] }
 0x3d6   : > { %3768 = vrsqrt.f32 %v2485_v33  ;;  %v2455_v2 = vmul.f32 %v2423_v57, %v2423_v57 }
 0x3d7   : > { %3770 = vrsqrt.f32 %v2484_v36  ;;  %v2383_v39 = vpop.xlane.xlu1 %2382  ;;  %v2454_v37 = vmul.f32 %v5332_v28, %v5332_v28 }
 0x3d8   : > { %v2439_v45 = vmul.f32 0.03125, %v2383_v39  ;;  %v2325_v24 = vpop.xlane.xlu0 %2324 }
 0x3d9   : > { %v5336_v1 = vmul.f32 0.03125, %v2325_v24  ;;  %v2519_v24 = vsub.f32 %v5196_v7, %v2423_v57  ;;  %v2518_v57 = vsub.f32 %v5199_v35, %v5332_v28 }
 0x3da   : > { %v2471_v58 = vsub.f32 %v2439_v45, %v2455_v2 }
 0x3db   : > { %v2380_v25 = vpop.xlane.xlu1 %2379  ;;  %v2457_v41 = vmul.f32 %v5336_v1, %v5336_v1  ;;  %v2521_v35 = vsub.f32 %v5207_v43, %v5336_v1 }
 0x3dc   : > { %v2487_v27 = vadd.f32 1e-05, %v2471_v58  ;;  %v2438_v48 = vmul.f32 0.03125, %v2380_v25  ;;  %v2322_v56 = vpop.xlane.xlu0 %2321 }
 0x3dd   : > { %v5342_v0 = vmul.f32 0.03125, %v2322_v56 }
 0x3de   : > { %3772 = vrsqrt.f32 %v2487_v27  ;;  %v2470_v42 = vsub.f32 %v2438_v48, %v2454_v37 }
 0x3df   : > { %v2389_v12 = vpop.xlane.xlu1 %2388  ;;  %v2456_v19 = vmul.f32 %v5342_v0, %v5342_v0  ;;  %v2520_v1 = vsub.f32 %v5215_v23, %v5342_v0 }
 0x3e0   : > { %v3769_v54 = vpop.eup %3768  ;;  %v2486_v10 = vadd.f32 1e-05, %v2470_v42  ;;  %v2441_v44 = vmul.f32 0.03125, %v2389_v12  ;;  %v2331_v38 = vpop.xlane.xlu0 %2330 }
 0x3e1   : > { %v3771_v40 = vpop.eup %3770  ;;  %v2533_v47 = vmul.f32 %v3769_v54, %v2517_v49  ;;  %v5354_v31 = vmul.f32 0.03125, %v2331_v38 }
 0x3e2   : > { %3774 = vrsqrt.f32 %v2486_v10  ;;  %v2473_v14 = vsub.f32 %v2441_v44, %v2457_v41  ;;  %v2532_v29 = vmul.f32 %v3771_v40, %v2516_v30 }
 0x3e3   : > { %v2386_v34 = vpop.xlane.xlu1 %2385  ;;  %v2555_v62 = vmul.f32 %v5347_v63, %v2533_v47  ;;  %v2459_v58 = vmul.f32 %v5354_v31, %v5354_v31  ;;  %v2523_v0 = vsub.f32 %v5223_v18, %v5354_v31 }
 0x3e4   : > { %v2489_v26 = vadd.f32 1e-05, %v2473_v14  ;;  %v2440_v46 = vmul.f32 0.03125, %v2386_v34  ;;  %v2328_v33 = vpop.xlane.xlu0 %2327  ;;  %v2554_v36 = vmul.f32 %v5347_v63, %v2532_v29 }
 0x3e5   : > { %v2577_v39 = vadd.f32 %v5352_v20, %v2555_v62  ;;  %v5371_v56 = vmul.f32 0.03125, %v2328_v33 }
 0x3e6   : > { %3776 = vrsqrt.f32 %v2489_v26  ;;  %v2472_v2 = vsub.f32 %v2440_v46, %v2456_v19  ;;  %v2576_v45 = vadd.f32 %v5352_v20, %v2554_v36 }
 0x3e7   : > { %v2395_v25 = vpop.xlane.xlu1 %2394  ;;  %v2600_v37 = vmul.f32 %v5362_v17, %v2577_v39  ;;  %v2458_v40 = vmul.f32 %v5371_v56, %v5371_v56  ;;  %v2522_v31 = vsub.f32 %v5231_v32, %v5371_v56  ;;  %v3900_v32 = vmov 0  }
 0x3e8   : > { %v3773_v27 = vpop.eup %3772  ;;  %v2488_v48 = vadd.f32 1e-05, %v2472_v2  ;;  %v2443_v42 = vmul.f32 0.03125, %v2395_v25  ;;  %v2337_v49 = vpop.xlane.xlu0 %2336  ;;  %v2599_v30 = vmul.f32 %v5362_v17, %v2576_v45  ;;  %3732 = vset.pattern.permute.xlu1 %v3900_v32  ;;  %3733 = vset.pattern.permute.xlu0 %v3900_v32 }
 0x3e9   : > { %v2618_v12 = vsel %vm537_vm2, %v2600_v37, 0.0  ;;  %v2535_v54 = vmul.f32 %v3773_v27, %v2519_v24  ;;  %v5381_v14 = vmul.f32 0.03125, %v2337_v49 }
 0x3ea   : > { %3778 = vrsqrt.f32 %v2488_v48  ;;  %v2475_v41 = vsub.f32 %v2443_v42, %v2459_v58  ;;  %2619 = vadd.xlane.f32.xlu1 %v2618_v12  ;;  %v2615_v7 = vsel %vm537_vm2, %v2599_v30, 0.0 }
 0x3eb   : > { %2616 = vadd.xlane.f32.xlu0 %v2615_v7  ;;  %v2392_v10 = vpop.xlane.xlu1 %2391  ;;  %v2557_v44 = vmul.f32 %v5347_v63, %v2535_v54  ;;  %v2461_v39 = vmul.f32 %v5381_v14, %v5381_v14 }
 0x3ec   : > { %v3775_v38 = vpop.eup %3774  ;;  %v2491_v47 = vadd.f32 1e-05, %v2475_v41  ;;  %v2442_v29 = vmul.f32 0.03125, %v2392_v10  ;;  %v2334_v34 = vpop.xlane.xlu0 %2333 }
 0x3ed   : > { %v2579_v62 = vadd.f32 %v5352_v20, %v2557_v44  ;;  %v2534_v19 = vmul.f32 %v3775_v38, %v2518_v57  ;;  %v5390_v45 = vmul.f32 0.03125, %v2334_v34 }
 0x3ee   : > { %3780 = vrsqrt.f32 %v2491_v47  ;;  %v2474_v26 = vsub.f32 %v2442_v29, %v2458_v40 }
 0x3ef   : > { %v2401_v28 = vpop.xlane.xlu1 %2400  ;;  %v2602_v46 = vmul.f32 %v5362_v17, %v2579_v62  ;;  %v2556_v33 = vmul.f32 %v5347_v63, %v2534_v19  ;;  %v2460_v12 = vmul.f32 %v5390_v45, %v5390_v45 }
 0x3f0   : > { %v3777_v36 = vpop.eup %3776  ;;  %v2490_v2 = vadd.f32 1e-05, %v2474_v26  ;;  %v2445_v24 = vmul.f32 0.03125, %v2401_v28  ;;  %v2343_v58 = vpop.xlane.xlu0 %2342 }
 0x3f1   : > { %v2624_v25 = vsel %vm537_vm2, %v2602_v46, 0.0  ;;  %v2578_v37 = vadd.f32 %v5352_v20, %v2556_v33  ;;  %v2537_v27 = vmul.f32 %v3777_v36, %v2521_v35  ;;  %v5400_v41 = vmul.f32 0.03125, %v2343_v58 }
 0x3f2   : > { %3782 = vrsqrt.f32 %v2490_v2  ;;  %v2477_v43 = vsub.f32 %v2445_v24, %v2461_v39  ;;  %2625 = vadd.xlane.f32.xlu1 %v2624_v25 }
 0x3f3   : > { %v2398_v48 = vpop.xlane.xlu1 %2397  ;;  %v2601_v42 = vmul.f32 %v5362_v17, %v2578_v37  ;;  %v2559_v49 = vmul.f32 %v5347_v63, %v2537_v27  ;;  %v2463_v19 = vmul.f32 %v5400_v41, %v5400_v41 }
 0x3f4   : > { %v3779_v30 = vpop.eup %3778  ;;  %v2493_v54 = vadd.f32 1e-05, %v2477_v43  ;;  %v2444_v7 = vmul.f32 0.03125, %v2398_v48  ;;  %v2340_v57 = vpop.xlane.xlu0 %2339 }
 0x3f5   : > { %v2621_v10 = vsel %vm537_vm2, %v2601_v42, 0.0  ;;  %v2581_v44 = vadd.f32 %v5352_v20, %v2559_v49  ;;  %v2536_v38 = vmul.f32 %v3779_v30, %v2520_v1  ;;  %v5406_v40 = vmul.f32 0.03125, %v2340_v57 }
 0x3f6   : > { %3784 = vrsqrt.f32 %v2493_v54  ;;  %v2476_v23 = vsub.f32 %v2444_v7, %v2460_v12  ;;  %2622 = vadd.xlane.f32.xlu0 %v2621_v10  ;;  %v2525_v30 = vsub.f32 %v5239_v22, %v5381_v14  ;;  %v2524_v14 = vsub.f32 %v5247_v60, %v5390_v45 }
 0x3f7   : > { %v2407_v47 = vpop.xlane.xlu1 %2406  ;;  %v2604_v29 = vmul.f32 %v5362_v17, %v2581_v44  ;;  %v2558_v34 = vmul.f32 %v5347_v63, %v2536_v38  ;;  %v2462_v39 = vmul.f32 %v5406_v40, %v5406_v40 }
 0x3f8   : > { %v3781_v62 = vpop.eup %3780  ;;  %v2492_v26 = vadd.f32 1e-05, %v2476_v23  ;;  %v2447_v35 = vmul.f32 0.03125, %v2407_v47  ;;  %v2349_v28 = vpop.xlane.xlu0 %2348 }
 0x3f9   : > { %v2630_v46 = vsel %vm537_vm2, %v2604_v29, 0.0  ;;  %v2580_v33 = vadd.f32 %v5352_v20, %v2558_v34  ;;  %v2539_v36 = vmul.f32 %v3781_v62, %v2523_v0  ;;  %v5420_v27 = vmul.f32 0.03125, %v2349_v28 }
 0x3fa   : > { %3786 = vrsqrt.f32 %v2492_v26  ;;  %v2479_v18 = vsub.f32 %v2447_v35, %v2463_v19  ;;  %2631 = vadd.xlane.f32.xlu1 %v2630_v46 }
 0x3fb   : > { %v2404_v2 = vpop.xlane.xlu1 %2403  ;;  %v2603_v24 = vmul.f32 %v5362_v17, %v2580_v33  ;;  %v2561_v58 = vmul.f32 %v5347_v63, %v2539_v36  ;;  %v2465_v10 = vmul.f32 %v5420_v27, %v5420_v27 }
 0x3fc   : > { %v3783_v25 = vpop.eup %3782  ;;  %v2495_v37 = vadd.f32 1e-05, %v2479_v18  ;;  %v2446_v43 = vmul.f32 0.03125, %v2404_v2  ;;  %v2346_v1 = vpop.xlane.xlu0 %2345 }
 0x3fd   : > { %v2627_v48 = vsel %vm537_vm2, %v2603_v24, 0.0  ;;  %v2583_v42 = vadd.f32 %v5352_v20, %v2561_v58  ;;  %v2538_v49 = vmul.f32 %v3783_v25, %v2522_v31  ;;  %v5430_v38 = vmul.f32 0.03125, %v2346_v1 }
 0x3fe   : > { %3788 = vrsqrt.f32 %v2495_v37  ;;  %v2478_v56 = vsub.f32 %v2446_v43, %v2462_v39  ;;  %2628 = vadd.xlane.f32.xlu0 %v2627_v48  ;;  %v2527_v24 = vsub.f32 %v5255_v3, %v5400_v41 }
 0x3ff   : > { %v2413_v12 = vpop.xlane.xlu1 %2412  ;;  %v2606_v54 = vmul.f32 %v5362_v17, %v2583_v42  ;;  %v2560_v7 = vmul.f32 %v5347_v63, %v2538_v49  ;;  %v2464_v28 = vmul.f32 %v5430_v38, %v5430_v38 }
 0x400   : > { %v3785_v57 = vpop.eup %3784  ;;  %v2494_v44 = vadd.f32 1e-05, %v2478_v56  ;;  %v2449_v23 = vmul.f32 0.03125, %v2413_v12  ;;  %v2355_v0 = vpop.xlane.xlu0 %2354 }
 0x401   : > { %v2636_v47 = vsel %vm537_vm2, %v2606_v54, 0.0  ;;  %v2582_v29 = vadd.f32 %v5352_v20, %v2560_v7  ;;  %v2541_v34 = vmul.f32 %v3785_v57, %v2525_v30  ;;  %v5440_v33 = vmul.f32 0.03125, %v2355_v0 }
 0x402   : > { %3790 = vrsqrt.f32 %v2494_v44  ;;  %v2481_v22 = vsub.f32 %v2449_v23, %v2465_v10  ;;  %2637 = vadd.xlane.f32.xlu1 %v2636_v47  ;;  %v2526_v54 = vsub.f32 %v5263_v52, %v5406_v40 }
 0x403   : > { %v2410_v62 = vpop.xlane.xlu1 %2409  ;;  %v2605_v19 = vmul.f32 %v5362_v17, %v2582_v29  ;;  %v2563_v26 = vmul.f32 %v5347_v63, %v2541_v34  ;;  %v2467_v1 = vmul.f32 %v5440_v33, %v5440_v33 }
 0x404   : > { %v3787_v35 = vpop.eup %3786  ;;  %v2497_v46 = vadd.f32 1e-05, %v2481_v22  ;;  %v2448_v36 = vmul.f32 0.03125, %v2410_v62  ;;  %v2352_v18 = vpop.xlane.xlu0 %2351  ;;  %v2529_v22 = vsub.f32 %v5271_v55, %v5420_v27 }
 0x405   : > { %v5442_v31 = vmul.f32 0.03125, %v2352_v18  ;;  %v2633_v39 = vsel %vm537_vm2, %v2605_v19, 0.0  ;;  %v2585_v60 = vadd.f32 %v5352_v20, %v2563_v26  ;;  %v2540_v45 = vmul.f32 %v3787_v35, %v2524_v14 }
 0x406   : > { %3792 = vrsqrt.f32 %v2497_v46  ;;  %v2480_v2 = vsub.f32 %v2448_v36, %v2464_v28  ;;  %2634 = vadd.xlane.f32.xlu0 %v2633_v39  ;;  %v2528_v35 = vsub.f32 %v5279_v9, %v5430_v38  ;;  %v2531_v39 = vsub.f32 %v5287_v13, %v5440_v33 }
 0x407   : > { %v2419_v58 = vpop.xlane.xlu1 %2418  ;;  %v2608_v25 = vmul.f32 %v5362_v17, %v2585_v60  ;;  %v2562_v37 = vmul.f32 %v5347_v63, %v2540_v45  ;;  %v2466_v42 = vmul.f32 %v5442_v31, %v5442_v31  ;;  %v2530_v9 = vsub.f32 %v5295_v8, %v5442_v31 }
 0x408   : > { %v3789_v43 = vpop.eup %3788  ;;  %v2496_v48 = vadd.f32 1e-05, %v2480_v2  ;;  %v2451_v49 = vmul.f32 0.03125, %v2419_v58  ;;  %v2416_v32 = vpop.xlane.xlu0 %2415 }
 0x409   : > { %v2450_v56 = vmul.f32 0.03125, %v2416_v32  ;;  %v2642_v30 = vsel %vm537_vm2, %v2608_v25, 0.0  ;;  %v2584_v3 = vadd.f32 %v5352_v20, %v2562_v37  ;;  %v2543_v41 = vmul.f32 %v3789_v43, %v2527_v24 }
 0x40a   : > { %3794 = vrsqrt.f32 %v2496_v48  ;;  %v2483_v12 = vsub.f32 %v2451_v49, %v2467_v1  ;;  %2643 = vadd.xlane.f32.xlu1 %v2642_v30 }
 0x40b   : > { %v2482_v7 = vsub.f32 %v2450_v56, %v2466_v42  ;;  %v2607_v57 = vmul.f32 %v5362_v17, %v2584_v3  ;;  %v2565_v10 = vmul.f32 %v5347_v63, %v2543_v41  ;;  %v3800_v56 = vld [vmem:[%s4815_s13] ss:$0 sm:$0xff]  ;;  %s441_s13 = sand.u32 1, %s3871_s24  }
 0x40c   : > { %v3791_v44 = vpop.eup %3790  ;;  %v2499_v23 = vadd.f32 1e-05, %v2483_v12  ;;  %v2730_v30 = vpop.permute.xlu0 %2729  ;;  %v2665_v12 = vstv %s3656_s20  ;;  %s442_s16 = scalar_lea.vmem [#allocation3], %s441_s13  ;;  %s2961_s18 = scalar_lea.sflag [#allocation4], %s441_s13 }
 0x40d   : > { %v2498_v0 = vadd.f32 1e-05, %v2482_v7  ;;  %v2639_v47 = vsel %vm537_vm2, %v2607_v57, 0.0  ;;  %v2587_v29 = vadd.f32 %v5352_v20, %v2565_v10  ;;  %v2542_v34 = vmul.f32 %v3791_v44, %v2526_v54  ;;  %s2975_s14 = sshll.u32 %s442_s16, 4  ;;  %s3901_s20 = smov [#allocation3]   ;;  %s5548_s14 = int_to_ptr.vmem [resolvable:$true] %s2975_s14 }
 0x40e   : > { %3796 = vrsqrt.f32 %v2499_v23  ;;  %2640 = vadd.xlane.f32.xlu0 %v2639_v47  ;;  %s3801_s28 = scalar_lea.vmem %s5548_s14, 16  ;;  %s3805_s21 = sshll.u32 %s3901_s20, 4  ;;  %s3806_s21 = int_to_ptr.vmem [resolvable:$false] %s3805_s21 }
 0x40f   : > { %3798 = vrsqrt.f32 %v2498_v0  ;;  %v2610_v52 = vmul.f32 %v5362_v17, %v2587_v29  ;;  %v2564_v40 = vmul.f32 %v5347_v63, %v2542_v34  ;;  %p3802_p0 = scmp.ne.s32.totalorder %s5548_s14, %s3801_s28  ;;  %s3807_s11 = scalar_lea.vmem %s3806_s21, 32 }
 0x410   : > { %v3793_v14 = vpop.eup %3792  ;;  %v2738_v41 = vpop.permute.xlu0 %2737  ;;  %p3808_p4 = scmp.lt.s32.totalorder %s5548_s14, %s3806_s21  ;;  %p3809_p5 = scmp.lt.s32.totalorder %s3807_s11, %s3801_s28 }
 0x411   : > { %v2648_v62 = vsel %vm537_vm2, %v2610_v52, 0.0  ;;  %v2586_v19 = vadd.f32 %v5352_v20, %v2564_v40  ;;  %v2545_v26 = vmul.f32 %v3793_v14, %v2529_v22  ;;  %p3803_p1 = pnand %p3802_p0, %p4021_p3 }
 0x412   : > { %2649 = vadd.xlane.f32.xlu1 %v2648_v62  ;;  %p3810_p6 = por %p3809_p5, %p3808_p4 }
 0x413   : > { %v2609_v28 = vmul.f32 %v5362_v17, %v2586_v19  ;;  %v2567_v46 = vmul.f32 %v5347_v63, %v2545_v26  ;;  %p3804_p2 = pneg %p3803_p1 }
 0x414   : > { %v3795_v55 = vpop.eup %3794 }
 0x415   : > { %v2645_v27 = vsel %vm537_vm2, %v2609_v28, 0.0  ;;  %v2589_v36 = vadd.f32 %v5352_v20, %v2567_v46  ;;  %v2544_v18 = vmul.f32 %v3795_v55, %v2528_v35  ;;  %p3811_p7 = pnand %p3810_p6, %p3804_p2 }
 0x416   : > { %2646 = vadd.xlane.f32.xlu0 %v2645_v27 }
 0x417   : > { %v2612_v60 = vmul.f32 %v5362_v17, %v2589_v36  ;;  %v2566_v45 = vmul.f32 %v5347_v63, %v2544_v18 }
 0x418   : > { %v3797_v2 = vpop.eup %3796 }
 0x419   : > { %v3799_v38 = vpop.eup %3798  ;;  %v2654_v24 = vsel %vm537_vm2, %v2612_v60, 0.0  ;;  %v2588_v58 = vadd.f32 %v5352_v20, %v2566_v45  ;;  %v2547_v25 = vmul.f32 %v3797_v2, %v2531_v39 }
 0x41a   : > { %2655 = vadd.xlane.f32.xlu1 %v2654_v24  ;;  %v2546_v37 = vmul.f32 %v3799_v38, %v2530_v9 }
 0x41b   : > { %v2611_v43 = vmul.f32 %v5362_v17, %v2588_v58  ;;  %v2569_v13 = vmul.f32 %v5347_v63, %v2547_v25 }
 0x41c   : > { %v2568_v33 = vmul.f32 %v5347_v63, %v2546_v37  ;;  %v2734_v63 = vpop.permute.xlu1 %2733 }
 0x41d   : > { %v2651_v1 = vsel %vm537_vm2, %v2611_v43, 0.0  ;;  %v2591_v48 = vadd.f32 %v5352_v20, %v2569_v13 }
 0x41e   : > { %2652 = vadd.xlane.f32.xlu0 %v2651_v1  ;;  %v2590_v8 = vadd.f32 %v5352_v20, %v2568_v33 }
 0x41f   : > { %v2614_v31 = vmul.f32 %v5362_v17, %v2591_v48  ;;  %v5504_v48 = vand.u32 127, %v1487_v6 }
 0x420   : > { %v2613_v42 = vmul.f32 %v5362_v17, %v2590_v8  ;;  %v2742_v3 = vpop.permute.xlu1 %2741 }
 0x421   : > { %v2660_v49 = vsel %vm537_vm2, %v2614_v31, 0.0  ;;  %v2853_v8 = vadd.s32 4294967288, %v5504_v48  ;;  %v2860_v31 = vadd.s32 4294967280, %v5504_v48 }
 0x422   : > { %2661 = vadd.xlane.f32.xlu1 %v2660_v49  ;;  %v2657_v32 = vsel %vm537_vm2, %v2613_v42, 0.0  ;;  %vm2865_vm2 = vcmask 195712  }
 0x423   : > { %2658 = vadd.xlane.f32.xlu0 %v2657_v32  ;;  %v2856_v49 = vsub.s32 %v2853_v8, %v4649_v50  ;;  %v2851_v32 = vsub.s32 %v5504_v48, %v4649_v50 }
 0x433   : > { %2749 = vbcast.lane.b32.xlu1 %v3800_v56, 376 }
 0x439   : > { %2745 = vbcast.lane.b32.xlu0 %v3800_v56, 368 }
 0x477   : > { %v2620_v20 = vpop.xlane.xlu1 %2619 }
 0x478   : > { %v2667_v54 = vadd.f32 %v2665_v12, %v2620_v20  ;;  %v2617_v7 = vpop.xlane.xlu0 %2616 }
 0x479   : > { %v2666_v57 = vadd.f32 %v2665_v12, %v2617_v7 }
 0x47a   : > { %v2768_v17 = vmul.f32 %v5312_v5, %v2667_v54 }
 0x47b   : > { %v2767_v10 = vmul.f32 %v5318_v15, %v2666_v57  ;;  %v2888_v57 = vadd.s32 4294967248, %v5504_v48 }
 0x47c   : > { %2803 = vperm.xlu1 %3732, %v2768_v17  }
 0x47d   : > { %2800 = vperm.xlu0 %3733, %v2767_v10   ;;  %v2881_v10 = vadd.s32 4294967256, %v5504_v48 }
 0x47f   : > { %v2626_v44 = vpop.xlane.xlu1 %2625 }
 0x480   : > { %v2669_v23 = vadd.f32 %v2665_v12, %v2626_v44 }
 0x482   : > { %v2770_v0 = vmul.f32 %v5316_v11, %v2669_v23 }
 0x483   : > { %v2623_v47 = vpop.xlane.xlu0 %2622 }
 0x484   : > { %v2668_v29 = vadd.f32 %v2665_v12, %v2623_v47  ;;  %2809 = vperm.xlu0 %3733, %v2770_v0  }
 0x486   : > { %v2769_v34 = vmul.f32 %v5314_v51, %v2668_v29 }
 0x487   : > { %v2632_v22 = vpop.xlane.xlu1 %2631 }
 0x488   : > { %v2671_v52 = vadd.f32 %v2665_v12, %v2632_v22  ;;  %2806 = vperm.xlu1 %3732, %v2769_v34   ;;  %v2891_v34 = vsub.s32 %v2888_v57, %v4649_v50  ;;  %v2902_v22 = vadd.s32 4294967232, %v5504_v48 }
 0x48a   : > { %v2772_v40 = vmul.f32 %v5320_v21, %v2671_v52 }
 0x48b   : > { %v2629_v14 = vpop.xlane.xlu0 %2628 }
 0x48c   : > { %v2670_v5 = vadd.f32 %v2665_v12, %v2629_v14  ;;  %2815 = vperm.xlu0 %3733, %v2772_v40   ;;  %v2884_v40 = vsub.s32 %v2881_v10, %v4649_v50  ;;  %v2895_v14 = vadd.s32 4294967240, %v5504_v48 }
 0x48e   : > { %v2771_v15 = vmul.f32 %v5322_v61, %v2670_v5 }
 0x48f   : > { %v2638_v62 = vpop.xlane.xlu1 %2637 }
 0x490   : > { %v2673_v19 = vadd.f32 %v2665_v12, %v2638_v62  ;;  %2812 = vperm.xlu1 %3732, %v2771_v15  }
 0x492   : > { %v2774_v11 = vmul.f32 %v5324_v16, %v2673_v19 }
 0x493   : > { %v2635_v26 = vpop.xlane.xlu0 %2634 }
 0x494   : > { %v2672_v35 = vadd.f32 %v2665_v12, %v2635_v26  ;;  %2821 = vperm.xlu0 %3733, %v2774_v11   ;;  %v2905_v26 = vsub.s32 %v2902_v22, %v4649_v50 }
 0x496   : > { %v2773_v51 = vmul.f32 %v5326_v4, %v2672_v35  ;;  %v2916_v35 = vadd.s32 4294967216, %v5504_v48 }
 0x497   : > { %v2644_v28 = vpop.xlane.xlu1 %2643 }
 0x498   : > { %v2675_v46 = vadd.f32 %v2665_v12, %v2644_v28  ;;  %2818 = vperm.xlu1 %3732, %v2773_v51   ;;  %v2898_v28 = vsub.s32 %v2895_v14, %v4649_v50 }
 0x49a   : > { %v2776_v21 = vmul.f32 %v5328_v53, %v2675_v46  ;;  %v2909_v46 = vadd.s32 4294967224, %v5504_v48 }
 0x49b   : > { %v2641_v55 = vpop.xlane.xlu0 %2640 }
 0x49c   : > { %v2674_v27 = vadd.f32 %v2665_v12, %v2641_v55  ;;  %2827 = vperm.xlu0 %3733, %v2776_v21  }
 0x49e   : > { %v2775_v61 = vmul.f32 %v5330_v59, %v2674_v27 }
 0x49f   : > { %v2650_v36 = vpop.xlane.xlu1 %2649 }
 0x4a0   : > { %v2677_v18 = vadd.f32 %v2665_v12, %v2650_v36  ;;  %2824 = vperm.xlu1 %3732, %v2775_v61  }
 0x4a2   : > { %v2778_v39 = vmul.f32 %v2734_v63, %v2677_v18  ;;  %v2863_v63 = vsub.s32 %v2860_v31, %v4649_v50  ;;  %v2919_v18 = vsub.s32 %v2916_v35, %v4649_v50 }
 0x4a3   : > { %v2647_v16 = vpop.xlane.xlu0 %2646 }
 0x4a4   : > { %v2676_v60 = vadd.f32 %v2665_v12, %v2647_v16  ;;  %2833 = vperm.xlu0 %3733, %v2778_v39   ;;  %v2930_v39 = vadd.s32 4294967200, %v5504_v48 }
 0x4a6   : > { %v2777_v45 = vmul.f32 %v2730_v30, %v2676_v60  ;;  %v2874_v30 = vadd.s32 4294967264, %v5504_v48  ;;  %v2912_v60 = vsub.s32 %v2909_v46, %v4649_v50 }
 0x4a7   : > { %v2656_v2 = vpop.xlane.xlu1 %2655 }
 0x4a8   : > { %v2679_v4 = vadd.f32 %v2665_v12, %v2656_v2  ;;  %2830 = vperm.xlu1 %3732, %v2777_v45   ;;  %v2877_v7 = vsub.s32 %v2874_v30, %v4649_v50  ;;  %v2923_v45 = vadd.s32 4294967208, %v5504_v48 }
 0x4aa   : > { %v2780_v9 = vmul.f32 %v2742_v3, %v2679_v4  ;;  %v2867_v3 = vadd.s32 4294967272, %v5504_v48 }
 0x4ab   : > { %v2653_v38 = vpop.xlane.xlu0 %2652 }
 0x4ac   : > { %v2678_v24 = vadd.f32 %v2665_v12, %v2653_v38  ;;  %2839 = vperm.xlu0 %3733, %v2780_v9   ;;  %v2870_v17 = vsub.s32 %v2867_v3, %v4649_v50 }
 0x4ae   : > { %v2779_v53 = vmul.f32 %v2738_v41, %v2678_v24 }
 0x4af   : > { %v2662_v58 = vpop.xlane.xlu1 %2661 }
 0x4b0   : > { %v2659_v25 = vpop.xlane.xlu0 %2658  ;;  %2836 = vperm.xlu1 %3732, %v2779_v53   ;;  %v2681_v59 = vadd.f32 %v2665_v12, %v2662_v58  ;;  %v2933_v53 = vsub.s32 %v2930_v39, %v4649_v50 }
 0x4b1   : > { %v2680_v37 = vadd.f32 %v2665_v12, %v2659_v25  ;;  %v2926_v25 = vsub.s32 %v2923_v45, %v4649_v50 }
 0x4b3   : > { %v2750_v43 = vpop.permute.xlu1 %2749 }
 0x4b4   : > { %v2782_v13 = vmul.f32 %v2750_v43, %v2681_v59  ;;  %v2746_v33 = vpop.permute.xlu0 %2745  ;;  %v2937_v59 = vadd.s32 4294967192, %v5504_v48  ;;  %v2944_v43 = vadd.s32 4294967184, %v5504_v48 }
 0x4b5   : > { %v2781_v1 = vmul.f32 %v2746_v33, %v2680_v37  ;;  %v2951_v33 = vadd.s32 4294967176, %v5504_v48 }
 0x4b6   : > { %2845 = vperm.xlu0 %3733, %v2782_v13  }
 0x4b7   : > { %2842 = vperm.xlu1 %3732, %v2781_v1  }
 0x4fb   : > { %v2804_v42 = vpop.permute.xlu1 %2803 }
 0x4fc   : > { %v2801_v56 = vpop.permute.xlu0 %2800  ;;  %v2857_v6 = vrot.slane %v2804_v42, %v2856_v49  ;;  %v2940_v49 = vsub.s32 %v2937_v59, %v4649_v50 }
 0x4fd   : > { %v2852_v12 = vrot.slane %v2801_v56, %v2851_v32  ;;  %v2947_v32 = vsub.s32 %v2944_v43, %v4649_v50 }
 0x4ff   : > { %v2859_v23 = vsel %vm2858_vm1, %v2857_v6, %v2852_v12 }
 0x503   : > { %v2810_v20 = vpop.permute.xlu0 %2809 }
 0x504   : > { %v2871_v52 = vrot.slane %v2810_v20, %v2870_v17 }
 0x507   : > { %v2807_v41 = vpop.permute.xlu1 %2806 }
 0x508   : > { %v2864_v54 = vrot.slane %v2807_v41, %v2863_v63  ;;  %v2954_v63 = vsub.s32 %v2951_v33, %v4649_v50 }
 0x50a   : > { %v2866_v0 = vsel %vm2865_vm2, %v2864_v54, %v2859_v23 }
 0x50b   : > { %v2816_v47 = vpop.permute.xlu0 %2815  ;;  %v2873_v15 = vsel %vm2872_vm3, %v2871_v52, %v2866_v0 }
 0x50c   : > { %v2885_v51 = vrot.slane %v2816_v47, %v2884_v40 }
 0x50f   : > { %v2813_v44 = vpop.permute.xlu1 %2812 }
 0x510   : > { %v2878_v29 = vrot.slane %v2813_v44, %v2877_v7 }
 0x512   : > { %v2880_v62 = vsel %vm2879_vm4, %v2878_v29, %v2873_v15 }
 0x513   : > { %v2822_v19 = vpop.permute.xlu0 %2821  ;;  %v2887_v55 = vsel %vm2886_vm5, %v2885_v51, %v2880_v62 }
 0x514   : > { %v2899_v16 = vrot.slane %v2822_v19, %v2898_v28 }
 0x517   : > { %v2819_v5 = vpop.permute.xlu1 %2818 }
 0x518   : > { %v2892_v11 = vrot.slane %v2819_v5, %v2891_v34 }
 0x51a   : > { %v2894_v27 = vsel %vm2893_vm6, %v2892_v11, %v2887_v55 }
 0x51b   : > { %v2828_v61 = vpop.permute.xlu0 %2827  ;;  %v2901_v4 = vsel %vm2900_vm7, %v2899_v16, %v2894_v27 }
 0x51c   : > { %v2913_v58 = vrot.slane %v2828_v61, %v2912_v60 }
 0x51f   : > { %v2825_v21 = vpop.permute.xlu1 %2824 }
 0x520   : > { %v2906_v36 = vrot.slane %v2825_v21, %v2905_v26 }
 0x522   : > { %v2908_v9 = vsel %vm2907_vm8, %v2906_v36, %v2901_v4 }
 0x523   : > { %v2834_v38 = vpop.permute.xlu0 %2833  ;;  %v2915_v13 = vsel %vm2914_vm9, %v2913_v58, %v2908_v9 }
 0x524   : > { %v2927_v42 = vrot.slane %v2834_v38, %v2926_v25 }
 0x527   : > { %v2831_v2 = vpop.permute.xlu1 %2830 }
 0x528   : > { %v2920_v24 = vrot.slane %v2831_v2, %v2919_v18 }
 0x52a   : > { %v2922_v1 = vsel %vm2921_vm10, %v2920_v24, %v2915_v13 }
 0x52b   : > { %v2840_v8 = vpop.permute.xlu0 %2839  ;;  %v2929_v56 = vsel %vm2928_vm11, %v2927_v42, %v2922_v1 }
 0x52c   : > { %v2941_v48 = vrot.slane %v2840_v8, %v2940_v49 }
 0x52f   : > { %v2837_v37 = vpop.permute.xlu1 %2836 }
 0x530   : > { %v2934_v31 = vrot.slane %v2837_v37, %v2933_v53 }
 0x532   : > { %v2936_v30 = vsel %vm2935_vm12, %v2934_v31, %v2929_v56 }
 0x533   : > { %v2943_v20 = vsel %vm2942_vm13, %v2941_v48, %v2936_v30 }
 0x535   : > { %v2846_v3 = vpop.permute.xlu0 %2845 }
 0x536   : > { %v2843_v41 = vpop.permute.xlu1 %2842  ;;  %v2955_v12 = vrot.slane %v2846_v3, %v2954_v63 }
 0x537   : > { %v2948_v6 = vrot.slane %v2843_v41, %v2947_v32 }
 0x539   : > { %v2950_v54 = vsel %vm2949_vm14, %v2948_v6, %v2943_v20 }
 0x53a   : > { %v2957_v50 = vsel %vm2956_vm15, %v2955_v12, %v2950_v54 }
 0x53b   : > { %2959 = vst [vmem:[%s442_s16] sm:$0x1] %v2957_v50 }
 0x53c   : > { %3814 = shalt.err (!%p3811_p7)
}
 0x53d   : > { %s3815_s13 = scalar_lea.hbm %s5546_s19, 16  ;;  %s3819_s26 = scalar_lea.hbm %s5613_s12, 64 }
 0x53e   : > { %p3816_p9 = scmp.ne.s32.totalorder %s5546_s19, %s3815_s13  ;;  %p3820_p12 = scmp.lt.u32.totalorder %s5546_s19, %s5613_s12 }
 0x53f   : > { %p3821_p13 = scmp.lt.u32.totalorder %s3819_s26, %s3815_s13  ;;  %p3823_p1 = scmp.lt.u32.totalorder %s3815_s13, %s5546_s19 }
 0x540   : > { %p3817_p10 = pnand %p3816_p9, %p4021_p3 }
 0x541   : > { %p3822_p0 = por %p3821_p13, %p3820_p12 }
 0x542   : > { %p3818_p11 = pneg %p3817_p10 }
 0x543   : > { %p3824_p2 = por %p3823_p1, %p3822_p0 }
 0x545   : > { %p3825_p4 = pnand %p3824_p2, %p3818_p11 }
 0x547   : > { %3828 = shalt.err (!%p3825_p4)
}
 0x548   : > { %3657 = dma.vmem_to_hbm [thread:$0]  (%p4021_p3), %s5548_s14, 16, %s5546_s19, %s2961_s18  }
 0x549 PF: > { %s5636_s28 = sld [smem:[#allocation6_spill]]  ;;  %p3663_p5 = scmp.ge.s32.totalorder %s3895_s30, 2 }
 0x54b   : > { %p3660_p6 = pnand %p3663_p5, %p4030_p8 }
 0x54f   : > { %s2987_s11 = sand.u32 1, %s5636_s28  }
 0x550   : > { %s2988_s27 = scalar_lea.sflag [#allocation4], %s2987_s11 }
 0x551   : > { %3862 = dma.done.wait (!%p3660_p6), %s2988_s27, 16  }
 0x552   : > { %3864 = vsyncadd (!%p3660_p6), %s2988_s27, 4294967280  ;;  %s27_s30 = sadd.s32 1, %s3895_s30   ;;  %s5638_s26 = sld [smem:[#allocation7_spill]] }
 0x553   : > { %p24_p7 = scmp.ge.s32.totalorder %s27_s30, 6   ;;  %s5639_s28 = sld [smem:[#allocation8_spill]] }
 0x554   : > { %s5640_s23 = smov %s3871_s24  ;;  %s5641_s24 = smov %s3875_s25 }
 0x555   : > { %s5642_s25 = smov %s4039_s22  ;;  %s5643_s27 = smov %s3891_s29 }
 0x556   : > { %s5644_s29 = smov %s5650_s15  ;;  %26 = sbr.rel (!%p24_p7) target bundleno = 8 (0x8), region = 107 }
 0x55d   :  { %2992 = vsyncpa [#allocation4], 1 }
 0x55e   :  { %2994 = vsyncpa [#allocation4 + $0x1], 1 }

</bundles_post_ra>
